<compile_context>
chip_gen: v6e
topology: v6e:2x2x1
jax: 0.10.0
libtpu: 0.0.40
codegen_flags: <defaults>
</compile_context>

<pallas_src>
import functools
import math

import jax
import jax.numpy as jnp
from jax import lax
from jax.experimental import pallas as pl
from jax.experimental.pallas import tpu as pltpu


# ---------------------------------------------------------------------------
# small math helpers used inside the kernels
# ---------------------------------------------------------------------------
_SQRT_2_OVER_PI = 0.7978845608028654


def _gelu_tanh(x):
    # tanh-approx GELU: tanh lowers to the EUP slot, freeing VALU in the FF
    # phase. ~1e-3 deviation vs torch's exact-erf gelu (tolerance decision,
    # consistent with the bf16 matmul policy of this kernel).
    return 0.5 * x * (1.0 + jnp.tanh(_SQRT_2_OVER_PI * (x + 0.044715 * x * x * x)))


def _layernorm(x, g, b, eps=1e-5):
    # stats in f32
    mu = jnp.mean(x, axis=-1, keepdims=True)
    var = jnp.mean(jnp.square(x - mu), axis=-1, keepdims=True)
    return (x - mu) * lax.rsqrt(var + eps) * g + b


def _attend(q, kv_ref, wo_ref, bo_ref, *, n_head, d_head, c):
    """Multi-head attention against a precomputed (L, 2C) bf16 K|V scratch.

    q is the (tq, C) f32 query projection (scale already folded into wq).
    Per head: scores -> softmax -> PV, then the output projection is
    accumulated per head directly into a (tq, C) f32 register accumulator
    (no per-head VMEM scratch round-trip)."""
    bf16 = jnp.bfloat16
    qb = q.astype(bf16)
    acc = jnp.zeros((q.shape[0], c), jnp.float32)
    for h in range(n_head):  # static, small; everything stays 2-D
        lo, hi = h * d_head, (h + 1) * d_head
        k_h = kv_ref[:, lo:hi]           # (L, d) bf16
        v_h = kv_ref[:, c + lo:c + hi]   # (L, d) bf16
        s = lax.dot_general(qb[:, lo:hi], k_h, (((1,), (1,)), ((), ())),
                            preferred_element_type=jnp.float32)       # (tq, L)
        m = jnp.max(s, axis=-1, keepdims=True)
        e = jnp.exp(s - m)
        p = e * pl.reciprocal(jnp.sum(e, axis=-1, keepdims=True), approx=True)
        pv = jnp.dot(p.astype(bf16), v_h, preferred_element_type=jnp.float32)
        acc = acc + jnp.dot(pv.astype(bf16), wo_ref[lo:hi, :],
                            preferred_element_type=jnp.float32)
    return acc + bo_ref[...]


# ---------------------------------------------------------------------------
# stage 1: GroupNorm(32, C, eps=1e-6) + conv_input (1x1) — one batch / step
# ---------------------------------------------------------------------------
def gn_conv_kernel(x_ref, pool_ref, gn_g, gn_b, ciw, cib, h_ref, *, n_groups):
    x0 = x_ref[...]                              # (HW, C) f32
    hw, c = x0.shape
    gs = c // n_groups
    pool = pool_ref[...]                         # (C, G) 0/1, f32
    inv_cnt = 1.0 / float(gs * hw)

    # two-pass group statistics via a skinny (C, G) pooling matmul (f32)
    grp_sum = jnp.sum(jnp.dot(x0, pool, preferred_element_type=jnp.float32),
                      axis=0, keepdims=True)                          # (1, G)
    mean_c = lax.dot_general(grp_sum * inv_cnt, pool,
                             (((1,), (1,)), ((), ())),
                             preferred_element_type=jnp.float32)      # (1, C)
    xc = x0 - mean_c
    grp_sq = jnp.sum(jnp.dot(xc * xc, pool, preferred_element_type=jnp.float32),
                     axis=0, keepdims=True)
    var_c = lax.dot_general(grp_sq * inv_cnt, pool,
                            (((1,), (1,)), ((), ())),
                            preferred_element_type=jnp.float32)
    xg = xc * lax.rsqrt(var_c + 1e-6) * gn_g[...] + gn_b[...]

    # conv_input: 1x1 conv == per-token matmul (bf16 on the MXU, f32 accum);
    # result stored in bf16 (halves the HBM round trip to stage 2)
    h_ref[...] = (jnp.dot(xg.astype(jnp.bfloat16), ciw[...],
                          preferred_element_type=jnp.float32)
                  + cib[...]).astype(h_ref.dtype)


# ---------------------------------------------------------------------------
# stage 2: transformer body + conv_output + long residual — one q-tile / step
# ---------------------------------------------------------------------------
def transformer_kernel(
    x0_ref, ctx_ref, htile_ref, hfull_ref,
    ln1g, ln1b, wq1, wkv1, wo1, bo1,
    ln2g, ln2b, wq2, wkv2, wo2, bo2,
    ln3g, ln3b, wga, bga, wgg, bgg, wg2, bg2,
    cow, cob,
    out_ref,
    kv_self, kv_cross,
    *, n_head, d_head, c, ff_chunk,
):
    bf16 = jnp.bfloat16
    f32 = jnp.float32

    # ---- per-batch K/V precompute (only on the first q tile of each batch) --
    # The q grid axis is "arbitrary", so kv_self / kv_cross persist across the
    # q tiles of a batch; they are recomputed when the batch changes.
    @pl.when(pl.program_id(1) == 0)
    def _():
        hfull = hfull_ref[...].astype(f32)                       # (HW, C)
        ln_kv = _layernorm(hfull, ln1g[...], ln1b[...])
        kv_self[...] = jnp.dot(ln_kv.astype(bf16), wkv1[...],
                               preferred_element_type=f32).astype(bf16)
        kv_cross[...] = jnp.dot(ctx_ref[...].astype(bf16), wkv2[...],
                                preferred_element_type=f32).astype(bf16)

    x0 = x0_ref[...]                          # (TQ, C) f32, long residual
    xq = htile_ref[...].astype(f32)           # (TQ, C) conv_input output tile

    # ---- LN1 + self-attention (queries = tile, K/V = all tokens, cached) ----
    res = xq
    q = jnp.dot(_layernorm(xq, ln1g[...], ln1b[...]).astype(bf16), wq1[...],
                preferred_element_type=f32)   # 1/sqrt(d_head) folded into wq1
    x = _attend(q, kv_self, wo1, bo1, n_head=n_head, d_head=d_head, c=c) + res

    # ---- LN2 + cross-attention over the context (K/V cached per batch) ----
    res = x
    q = jnp.dot(_layernorm(x, ln2g[...], ln2b[...]).astype(bf16), wq2[...],
                preferred_element_type=f32)
    x = _attend(q, kv_cross, wo2, bo2, n_head=n_head, d_head=d_head, c=c) + res

    # ---- LN3 + GEGLU feed-forward, chunked over the 4C axis ----
    res = x
    xl = _layernorm(x, ln3g[...], ln3b[...]).astype(bf16)
    ff = wga.shape[1]
    fc = ff_chunk
    n_chunks = ff // fc

    def ff_body(lo, acc):
        a = (jnp.dot(xl, wga[:, pl.ds(lo, fc)], preferred_element_type=f32)
             + bga[:, pl.ds(lo, fc)])
        g = (jnp.dot(xl, wgg[:, pl.ds(lo, fc)], preferred_element_type=f32)
             + bgg[:, pl.ds(lo, fc)])
        hg = (a * _gelu_tanh(g)).astype(bf16)
        return acc + jnp.dot(hg, wg2[pl.ds(lo, fc), :],
                             preferred_element_type=f32)

    acc = jnp.zeros(x.shape, f32)
    if n_chunks <= 4:
        for j in range(n_chunks):             # static: small trip count
            acc = ff_body(j * fc, acc)
    else:
        # real loop bounds live ranges / spills at production 4C widths
        acc = lax.fori_loop(
            0, n_chunks,
            lambda j, a: ff_body(pl.multiple_of(j * fc, fc), a),
            acc)
    x = acc + bg2[...] + res

    # ---- conv_output (1x1) + long residual ----
    out_ref[...] = (jnp.dot(x.astype(bf16), cow[...],
                            preferred_element_type=f32) + cob[...] + x0)


# ---------------------------------------------------------------------------
# parameter init (deterministic, synthetic); matmul weights stored in bf16
# ---------------------------------------------------------------------------
def init_params(key, n_head, n_embed, d_context):
    c = n_head * n_embed
    ff = 4 * c
    keys = iter(jax.random.split(key, 40))

    def nrm(shape):
        return jax.random.normal(next(keys), shape, dtype=jnp.float32)

    def w(shape, fan_in):
        return (nrm(shape) / math.sqrt(fan_in)).astype(jnp.bfloat16)

    def b(shape):
        return 0.02 * nrm(shape)

    def gamma(shape):
        return 1.0 + 0.05 * nrm(shape)

    def beta(shape):
        return 0.05 * nrm(shape)

    return {
        "gn_g": gamma((1, c)), "gn_b": beta((1, c)),
        "ciw": w((c, c), c), "cib": b((1, c)),
        "ln1g": gamma((1, c)), "ln1b": beta((1, c)),
        "wq1": w((c, c), c), "wk1": w((c, c), c), "wv1": w((c, c), c),
        "wo1": w((c, c), c), "bo1": b((1, c)),
        "ln2g": gamma((1, c)), "ln2b": beta((1, c)),
        "wq2": w((c, c), c), "wk2": w((d_context, c), d_context),
        "wv2": w((d_context, c), d_context), "wo2": w((c, c), c), "bo2": b((1, c)),
        "ln3g": gamma((1, c)), "ln3b": beta((1, c)),
        "wga": w((c, ff), c), "bga": b((1, ff)),
        "wgg": w((c, ff), c), "bgg": b((1, ff)),
        "wg2": w((ff, c), ff), "bg2": b((1, c)),
        "cow": w((c, c), c), "cob": b((1, c)),
    }


# ---------------------------------------------------------------------------
# wrapper: NCHW <-> token layout + the two pallas_calls
# ---------------------------------------------------------------------------
def _vmem_limit_bytes():
    # ~75% of the chip's physical VMEM (v5e/v6e 128 MiB -> 96 MiB, v7x 64 MiB
    # -> 48 MiB), capped at 100 MiB, with a safe fallback if the query fails.
    cap = 64 * 1024 * 1024
    try:
        info = pltpu.get_tpu_info()
        cap = int(getattr(info, "vmem_capacity_bytes", cap)) or cap
    except Exception:
        pass
    return min(int(cap * 3 // 4), 100 * 1024 * 1024)


def _full_spec(shape, n_grid):
    zeros = (0,) * len(shape)
    if n_grid == 1:
        return pl.BlockSpec(shape, lambda i, _z=zeros: _z)
    return pl.BlockSpec(shape, lambda i, j, _z=zeros: _z)


def unet_attention_block(x_nchw, context, params, n_head):
    n, c, h, w = x_nchw.shape
    hw = h * w
    d_head = c // n_head
    n_groups = 32
    assert c % n_groups == 0, "GroupNorm(32) requires channels % 32 == 0"
    t_ctx, d_ctx = context.shape[1], context.shape[2]
    vmem_limit = _vmem_limit_bytes()

    # NCHW -> (N, HW, C) token layout (matches x.view(n,c,h*w).transpose(-1,-2))
    x_tok = jnp.transpose(x_nchw, (0, 2, 3, 1)).reshape(n, hw, c).astype(jnp.float32)

    # host-precomputed (C, G) group-pooling matrix (0/1), stats stay f32
    gs = c // n_groups
    pool = (jnp.arange(c)[:, None] // gs ==
            jnp.arange(n_groups)[None, :]).astype(jnp.float32)

    # ---- stage 1: GroupNorm + conv_input (grid over batch), bf16 output ----
    gn_args = [pool, params["gn_g"], params["gn_b"], params["ciw"], params["cib"]]
    in_specs_1 = ([pl.BlockSpec((None, hw, c), lambda i: (i, 0, 0))]
                  + [_full_spec(p.shape, 1) for p in gn_args])
    h_tok = pl.pallas_call(
        functools.partial(gn_conv_kernel, n_groups=n_groups),
        out_shape=jax.ShapeDtypeStruct((n, hw, c), jnp.bfloat16),
        grid=(n,),
        in_specs=in_specs_1,
        out_specs=pl.BlockSpec((None, hw, c), lambda i: (i, 0, 0)),
        compiler_params=pltpu.CompilerParams(
            dimension_semantics=("parallel",),
            vmem_limit_bytes=vmem_limit),
    )(x_tok, *gn_args)

    # ---- host-side weight packing (fused K|V, scale folded into wq) ----
    scale = 1.0 / math.sqrt(d_head)
    wq1 = (params["wq1"].astype(jnp.float32) * scale).astype(jnp.bfloat16)
    wq2 = (params["wq2"].astype(jnp.float32) * scale).astype(jnp.bfloat16)
    wkv1 = jnp.concatenate([params["wk1"], params["wv1"]], axis=1)     # (C, 2C)
    wkv2 = jnp.concatenate([params["wk2"], params["wv2"]], axis=1)     # (d_ctx, 2C)

    weights = [
        params["ln1g"], params["ln1b"], wq1, wkv1, params["wo1"], params["bo1"],
        params["ln2g"], params["ln2b"], wq2, wkv2, params["wo2"], params["bo2"],
        params["ln3g"], params["ln3b"],
        params["wga"], params["bga"], params["wgg"], params["bgg"],
        params["wg2"], params["bg2"],
        params["cow"], params["cob"],
    ]

    # ---- stage 2: attention / FF body (grid over batch x query tiles) ----
    # tq=256 fills the 256-wide MXU rows on v6e/v7x; 128 fallback otherwise.
    if hw % 256 == 0:
        tq = 256
    elif hw % 128 == 0:
        tq = 128
    else:
        tq = hw
    assert hw % tq == 0
    n_qt = hw // tq
    ff = 4 * c
    ff_chunk = 256 if ff % 256 == 0 else ff

    in_specs_2 = ([pl.BlockSpec((None, tq, c), lambda b, q: (b, q, 0)),         # x0 tile (long residual)
                   pl.BlockSpec((None, t_ctx, d_ctx), lambda b, q: (b, 0, 0)),  # context
                   pl.BlockSpec((None, tq, c), lambda b, q: (b, q, 0)),         # conv_input tile
                   pl.BlockSpec((None, hw, c), lambda b, q: (b, 0, 0))]         # all tokens (K/V side)
                  + [_full_spec(p.shape, 2) for p in weights])

    out_tok = pl.pallas_call(
        functools.partial(transformer_kernel, n_head=n_head, d_head=d_head,
                          c=c, ff_chunk=ff_chunk),
        out_shape=jax.ShapeDtypeStruct((n, hw, c), jnp.float32),
        grid=(n, n_qt),
        in_specs=in_specs_2,
        out_specs=pl.BlockSpec((None, tq, c), lambda b, q: (b, q, 0)),
        scratch_shapes=[pltpu.VMEM((hw, 2 * c), jnp.bfloat16),    # self-attn K|V
                        pltpu.VMEM((t_ctx, 2 * c), jnp.bfloat16)],  # cross-attn K|V
        compiler_params=pltpu.CompilerParams(
            # q axis carries the per-batch K/V scratch -> "arbitrary";
            # batch axis stays "parallel" for megacore sharding.
            dimension_semantics=("parallel", "arbitrary"),
            vmem_limit_bytes=vmem_limit),
    )(x_tok, context, h_tok, h_tok, *weights)

    # (N, HW, C) -> NCHW (matches x.transpose(-1,-2).view(n,c,h,w))
    return jnp.transpose(out_tok.reshape(n, h, w, c), (0, 3, 1, 2))


# ---------------------------------------------------------------------------
if __name__ == "__main__":
    key = jax.random.PRNGKey(0)
    kx, kc, kp = jax.random.split(key, 3)

    # GroupNorm(32)-compatible config with lane-dense (128) channels:
    # channels = n_head * n_embed = 128, HW = 16*32 = 512 -> two 256-token
    # query tiles (exercises the per-batch K/V cache across q tiles).
    n_head, n_embed, d_context = 2, 64, 96
    channels = n_head * n_embed
    N, H, W = 2, 16, 32
    T_ctx = 16

    x = jax.random.normal(kx, (N, channels, H, W), dtype=jnp.float32)
    context = jax.random.normal(kc, (N, T_ctx, d_context), dtype=jnp.float32)
    params = init_params(kp, n_head, n_embed, d_context)

    out = unet_attention_block(x, context, params, n_head)
    out = jax.block_until_ready(out)

    assert out.shape == x.shape, f"bad output shape {out.shape}"
    assert bool(jnp.all(jnp.isfinite(out))), "non-finite values in output"
    print("KERNEL_OK")
</pallas_src>

<mosaic_0001>
module attributes {stable_mosaic.version = 11 : i64} {
  func.func @gn_conv_kernel(%arg0: i32, %arg1: memref<1x512x128xf32, #tpu.memory_space<vmem>>, %arg2: memref<128x32xf32, #tpu.memory_space<vmem>>, %arg3: memref<1x128xf32, #tpu.memory_space<vmem>>, %arg4: memref<1x128xf32, #tpu.memory_space<vmem>>, %arg5: memref<128x128xbf16, #tpu.memory_space<vmem>>, %arg6: memref<1x128xf32, #tpu.memory_space<vmem>>, %arg7: memref<1x512x128xbf16, #tpu.memory_space<vmem>>) attributes {dimension_semantics = [#tpu.dimension_semantics<parallel>], iteration_bounds = array<i64: 2>, scalar_prefetch = 0 : i64, scratch_operands = 0 : i64, tpu.core_type = #tpu.core_type<tc>, window_params = [{transform_indices = @transform_0, window_bounds = array<i64: 1, 512, 128>}, {pipeline_mode = #tpu.pipeline_mode<synchronous>, transform_indices = @transform_1, window_bounds = array<i64: 128, 32>}, {pipeline_mode = #tpu.pipeline_mode<synchronous>, transform_indices = @transform_2, window_bounds = array<i64: 1, 128>}, {pipeline_mode = #tpu.pipeline_mode<synchronous>, transform_indices = @transform_3, window_bounds = array<i64: 1, 128>}, {pipeline_mode = #tpu.pipeline_mode<synchronous>, transform_indices = @transform_4, window_bounds = array<i64: 128, 128>}, {pipeline_mode = #tpu.pipeline_mode<synchronous>, transform_indices = @transform_5, window_bounds = array<i64: 1, 128>}, {transform_indices = @transform_6, window_bounds = array<i64: 1, 512, 128>}]} {
    %c0 = arith.constant 0 : index
    %c0_0 = arith.constant 0 : index
    %c0_1 = arith.constant 0 : index
    %0 = vector.load %arg1[%c0, %c0_0, %c0_1] : memref<1x512x128xf32, #tpu.memory_space<vmem>>, vector<1x512x128xf32>
    %1 = vector.shape_cast %0 : vector<1x512x128xf32> to vector<512x128xf32>
    %c0_2 = arith.constant 0 : index
    %c0_3 = arith.constant 0 : index
    %2 = vector.load %arg2[%c0_2, %c0_3] : memref<128x32xf32, #tpu.memory_space<vmem>>, vector<128x32xf32>
    %cst = arith.constant dense<0.000000e+00> : vector<512x32xf32>
    %3 = tpu.matmul %1, %2, %cst {dimension_numbers = #tpu.dot_dimension_numbers<[1], [0], [0], [1], [0, 0, 1, 1], [], []>} : vector<512x128xf32>, vector<128x32xf32>, vector<512x32xf32> -> vector<512x32xf32>
    %cst_4 = arith.constant dense<0.000000e+00> : vector<32xf32>
    %4 = vector.multi_reduction <add>, %3, %cst_4 [0] : vector<512x32xf32> to vector<32xf32>
    %5 = vector.shape_cast %4 : vector<32xf32> to vector<1x32xf32>
    %cst_5 = arith.constant 4.8828125E-4 : f32
    %6 = vector.broadcast %cst_5 : f32 to vector<1x32xf32>
    %7 = arith.mulf %5, %6 : vector<1x32xf32>
    %cst_6 = arith.constant dense<0.000000e+00> : vector<1x128xf32>
    %8 = tpu.matmul %7, %2, %cst_6 {dimension_numbers = #tpu.dot_dimension_numbers<[1], [1], [0], [0], [0, 0, 1, 0], [], []>} : vector<1x32xf32>, vector<128x32xf32>, vector<1x128xf32> -> vector<1x128xf32>
    %9 = vector.broadcast %8 : vector<1x128xf32> to vector<512x128xf32>
    %10 = arith.subf %1, %9 : vector<512x128xf32>
    %11 = arith.mulf %10, %10 : vector<512x128xf32>
    %cst_7 = arith.constant dense<0.000000e+00> : vector<512x32xf32>
    %12 = tpu.matmul %11, %2, %cst_7 {dimension_numbers = #tpu.dot_dimension_numbers<[1], [0], [0], [1], [0, 0, 1, 1], [], []>} : vector<512x128xf32>, vector<128x32xf32>, vector<512x32xf32> -> vector<512x32xf32>
    %cst_8 = arith.constant dense<0.000000e+00> : vector<32xf32>
    %13 = vector.multi_reduction <add>, %12, %cst_8 [0] : vector<512x32xf32> to vector<32xf32>
    %14 = vector.shape_cast %13 : vector<32xf32> to vector<1x32xf32>
    %cst_9 = arith.constant 4.8828125E-4 : f32
    %15 = vector.broadcast %cst_9 : f32 to vector<1x32xf32>
    %16 = arith.mulf %14, %15 : vector<1x32xf32>
    %cst_10 = arith.constant dense<0.000000e+00> : vector<1x128xf32>
    %17 = tpu.matmul %16, %2, %cst_10 {dimension_numbers = #tpu.dot_dimension_numbers<[1], [1], [0], [0], [0, 0, 1, 0], [], []>} : vector<1x32xf32>, vector<128x32xf32>, vector<1x128xf32> -> vector<1x128xf32>
    %cst_11 = arith.constant 9.99999997E-7 : f32
    %18 = vector.broadcast %cst_11 : f32 to vector<1x128xf32>
    %19 = arith.addf %17, %18 : vector<1x128xf32>
    %20 = math.rsqrt %19 : vector<1x128xf32>
    %21 = vector.broadcast %20 : vector<1x128xf32> to vector<512x128xf32>
    %22 = arith.mulf %10, %21 : vector<512x128xf32>
    %c0_12 = arith.constant 0 : index
    %c0_13 = arith.constant 0 : index
    %23 = vector.load %arg3[%c0_12, %c0_13] : memref<1x128xf32, #tpu.memory_space<vmem>>, vector<1x128xf32>
    %24 = vector.broadcast %23 : vector<1x128xf32> to vector<512x128xf32>
    %25 = arith.mulf %22, %24 : vector<512x128xf32>
    %c0_14 = arith.constant 0 : index
    %c0_15 = arith.constant 0 : index
    %26 = vector.load %arg4[%c0_14, %c0_15] : memref<1x128xf32, #tpu.memory_space<vmem>>, vector<1x128xf32>
    %27 = vector.broadcast %26 : vector<1x128xf32> to vector<512x128xf32>
    %28 = arith.addf %25, %27 : vector<512x128xf32>
    %29 = arith.truncf %28 : vector<512x128xf32> to vector<512x128xbf16>
    %c0_16 = arith.constant 0 : index
    %c0_17 = arith.constant 0 : index
    %30 = vector.load %arg5[%c0_16, %c0_17] : memref<128x128xbf16, #tpu.memory_space<vmem>>, vector<128x128xbf16>
    %cst_18 = arith.constant dense<0.000000e+00> : vector<512x128xf32>
    %31 = tpu.matmul %29, %30, %cst_18 {dimension_numbers = #tpu.dot_dimension_numbers<[1], [0], [0], [1], [0, 0, 1, 1], [], []>} : vector<512x128xbf16>, vector<128x128xbf16>, vector<512x128xf32> -> vector<512x128xf32>
    %c0_19 = arith.constant 0 : index
    %c0_20 = arith.constant 0 : index
    %32 = vector.load %arg6[%c0_19, %c0_20] : memref<1x128xf32, #tpu.memory_space<vmem>>, vector<1x128xf32>
    %33 = vector.broadcast %32 : vector<1x128xf32> to vector<512x128xf32>
    %34 = arith.addf %31, %33 : vector<512x128xf32>
    %35 = arith.truncf %34 : vector<512x128xf32> to vector<512x128xbf16>
    %c0_21 = arith.constant 0 : index
    %c0_22 = arith.constant 0 : index
    %c0_23 = arith.constant 0 : index
    %36 = vector.load %arg7[%c0_21, %c0_22, %c0_23] : memref<1x512x128xbf16, #tpu.memory_space<vmem>>, vector<1x512x128xbf16>
    %37 = vector.shape_cast %36 : vector<1x512x128xbf16> to vector<512x128xbf16>
    %38 = vector.shape_cast %35 : vector<512x128xbf16> to vector<1x512x128xbf16>
    tpu.vector_store %arg7[%c0_21, %c0_22, %c0_23], %38 {strides = array<i32>} : memref<1x512x128xbf16, #tpu.memory_space<vmem>>, vector<1x512x128xbf16>,
    return
  }
  func.func @transform_0(%arg0: i32) -> (i32, i32, i32) {
    %c0_i32 = arith.constant 0 : i32
    %c0_i32_0 = arith.constant 0 : i32
    %c0_i32_1 = arith.constant 0 : i32
    return %arg0, %c0_i32, %c0_i32_0 : i32, i32, i32
  }
  func.func @transform_1(%arg0: i32) -> (i32, i32) {
    %c0_i32 = arith.constant 0 : i32
    %c0_i32_0 = arith.constant 0 : i32
    %c0_i32_1 = arith.constant 0 : i32
    return %c0_i32, %c0_i32_0 : i32, i32
  }
  func.func @transform_2(%arg0: i32) -> (i32, i32) {
    %c0_i32 = arith.constant 0 : i32
    %c0_i32_0 = arith.constant 0 : i32
    %c0_i32_1 = arith.constant 0 : i32
    return %c0_i32, %c0_i32_0 : i32, i32
  }
  func.func @transform_3(%arg0: i32) -> (i32, i32) {
    %c0_i32 = arith.constant 0 : i32
    %c0_i32_0 = arith.constant 0 : i32
    %c0_i32_1 = arith.constant 0 : i32
    return %c0_i32, %c0_i32_0 : i32, i32
  }
  func.func @transform_4(%arg0: i32) -> (i32, i32) {
    %c0_i32 = arith.constant 0 : i32
    %c0_i32_0 = arith.constant 0 : i32
    %c0_i32_1 = arith.constant 0 : i32
    return %c0_i32, %c0_i32_0 : i32, i32
  }
  func.func @transform_5(%arg0: i32) -> (i32, i32) {
    %c0_i32 = arith.constant 0 : i32
    %c0_i32_0 = arith.constant 0 : i32
    %c0_i32_1 = arith.constant 0 : i32
    return %c0_i32, %c0_i32_0 : i32, i32
  }
  func.func @transform_6(%arg0: i32) -> (i32, i32, i32) {
    %c0_i32 = arith.constant 0 : i32
    %c0_i32_0 = arith.constant 0 : i32
    %c0_i32_1 = arith.constant 0 : i32
    return %arg0, %c0_i32, %c0_i32_0 : i32, i32, i32
  }
}

</mosaic_0001>

<bundles_post_ra>
// kernel: tpu_custom_call.1
= control target key start
LH: loop header
LB: loop body
LE: loop exit
PB: predicated region body
PF: predicated region fallthrough
CT: control target
= control target key end

     0   :  { %11 = vsyncpa [#allocation3], 0  ;;  %s5847_s0 = inlined_call_operand.hbm [shape: f32[2,512,128], index: 0, kind: input, shape index: {}]   ;;  %s5848_s1 = inlined_call_operand.vmem [shape: f32[128,32], index: 1, kind: input, shape index: {}]   ;;  %s5849_s2 = inlined_call_operand.vmem [shape: f32[1,128], index: 2, kind: input, shape index: {}]   ;;  %s5850_s3 = inlined_call_operand.vmem [shape: f32[1,128], index: 3, kind: input, shape index: {}]   ;;  %s5851_s4 = inlined_call_operand.vmem [shape: bf16[128,128], index: 4, kind: input, shape index: {}]   ;;  %s5852_s5 = inlined_call_operand.vmem [shape: f32[1,128], index: 5, kind: input, shape index: {}]   ;;  %s5853_s6 = inlined_call_operand.hbm [shape: bf16[2,512,128], index: 6, kind: output, shape index: {}]  }
   0x1   :  { %13 = vsyncpa [#allocation3 + $0x1], 0 }
   0x2   :  { %14 = vsyncpa [#allocation4], 0 }
   0x3   :  { %16 = vsyncpa [#allocation4 + $0x1], 0  ;;  %s3991_s21 = smov 0   ;;  %s3993_s22 = smov 0  }
   0x4   :  { %s3995_s23 = smov 0   ;;  %s3997_s24 = smov 0  }
   0x5 LB: > { %s4012_s25 = sadd.s32 4294967295, %s3946_s24   ;;  %s2726_s26 = sadd.s32 4294967294, %s3946_s24   ;;  %s3946_s24 = sphi %s3997_s24, %s6048_s24   ;;  %s3942_s23 = sphi %s3995_s23, %s6047_s23   ;;  %s3938_s22 = sphi %s3993_s22, %s6046_s22   ;;  %s3934_s21 = sphi %s3991_s21, %s6045_s21  }
   0x6   : > { %s4016_s27 = sadd.s32 1, %s3946_s24   ;;  %s29_s28 = sadd.s32 1, %s3942_s23 }
   0x7   : > { %s26_s29 = ssub.s32 %s3946_s24, %s4016_s27  ;;  %p36_p0 = scmp.ne.s32.totalorder %s3942_s23, %s3938_s22 }
   0x8   : > { %p27_p1 = scmp.eq.s32.totalorder %s26_s29, 0  ;;  %p37_p2 = scmp.eq.s32.totalorder %s3946_s24, 0 }
   0x9   : > { %p42_p3 = scmp.ne.s32.totalorder %s3938_s22, %s3934_s21  ;;  %p43_p4 = scmp.eq.s32.totalorder %s4012_s25, 0 }
   0xa   : > { %s4028_s30 = scalar_select %p27_p1, %s3942_s23, %s29_s28  }
   0xb   : > { %p4030_p5 = por %p37_p2, %p36_p0  ;;  %p4034_p6 = por %p43_p4, %p42_p3 }
   0xc   : > { %p171_p7 = scmp.eq.s32.totalorder %s4012_s25, 1  ;;  %p177_p8 = scmp.eq.s32.totalorder %s2726_s26, 1 }
   0xd   : > { %s5917_s8 = scalar_select %p4034_p6, 1, 0 }
   0xe   : > { %p3790_p10 = scmp.lt.s32.totalorder %s3946_s24, 2  ;;  %p4041_p11 = por %p171_p7, %p36_p0 }
   0xf   : > { %p4045_p12 = por %p177_p8, %p42_p3  ;;  %s212_s11 = sand.u32 1, %s3942_s23  }
  0x10   : > { %s5918_s9 = scalar_select %p4041_p11, 1, 0 }
  0x11   : > { %s5919_s10 = scalar_select %p4045_p12, 1, 0 }
  0x12   : > { %s2849_s12 = sshll.u32 %s3946_s24, 13  ;;  %s2729_s13 = sshll.u32 %s212_s11, 9 }
  0x13   : > { %s4054_s16 = scalar_lea.hbm %s5847_s0, %s2849_s12  ;;  %s216_s17 = scalar_lea.vmem [#allocation2], %s2729_s13 }
  0x14   : > { %s223_s18 = sshll.u32 %s216_s17, 4  ;;  %p4058_p13 = pnand %p3790_p10, %p4030_p5  ;;  %s4062_s18 = int_to_ptr.vmem [resolvable:$true] %s223_s18 }
  0x15   : > { %s4064_s20 = scalar_lea.sflag [#allocation3], %s212_s11  ;;  %s3854_s26 = scalar_lea.hbm %s4054_s16, 8192 }
  0x16   : > { %p3855_p0 = scmp.ne.s32.totalorder %s4054_s16, %s3854_s26  ;;  %p3856_p1 = pneg %p4058_p13 }
  0x17   : > { %s3859_s12 = scalar_lea.hbm %s5847_s0, 16384  ;;  %p3860_p4 = scmp.lt.s32.totalorder %s4054_s16, %s5847_s0 }
  0x18   : > { %p3857_p2 = pnand %p3856_p1, %p3855_p0  ;;  %p3861_p5 = scmp.lt.s32.totalorder %s3859_s12, %s3854_s26 }
  0x1a   : > { %p3858_p3 = pneg %p3857_p2  ;;  %p3862_p7 = por %p3861_p5, %p3860_p4 }
  0x1c   : > { %p3863_p8 = pnand %p3862_p7, %p3858_p3 }
  0x1e   : > { %3866 = shalt.err (!%p3863_p8)
}
  0x1f   : > { %s3867_s11 = scalar_lea.vmem %s4062_s18, 8192  ;;  %s3948_s14 = smov [#allocation2]  }
  0x20   : > { %p3868_p10 = scmp.ne.s32.totalorder %s4062_s18, %s3867_s11  ;;  %s3872_s15 = sshll.u32 %s3948_s14, 4  ;;  %s3873_s15 = int_to_ptr.vmem [resolvable:$false] %s3872_s15 }
  0x21   : > { %s3874_s17 = scalar_lea.vmem %s3873_s15, 16384  ;;  %p3875_p2 = scmp.lt.s32.totalorder %s4062_s18, %s3873_s15 }
  0x22   : > { %p3870_p9 = pnand %p3868_p10, %p3856_p1  ;;  %p3876_p12 = scmp.lt.s32.totalorder %s3874_s17, %s3867_s11 }
  0x24   : > { %p3871_p0 = pneg %p3870_p9  ;;  %p3877_p11 = por %p3876_p12, %p3875_p2 }
  0x26   : > { %p3878_p6 = pnand %p3877_p11, %p3871_p0 }
  0x28   : > { %3881 = shalt.err (!%p3878_p6)
}
  0x29   : > { %s3949_s26 = smov 128   ;;  %s3950_s28 = smov 8  }
  0x2a   : > { %3785 = dma.hbm_to_vmem [thread:$0]  (!%p4058_p13), %s4054_s16, 8192, %s4062_s18, %s4064_s20, %s3949_s26, %s3949_s26, %s3950_s28  }
  0x2b   : > { %p2732_p9 = scmp.ge.s32.totalorder %s3946_s24, 1  ;;  %p231_p1 = scmp.lt.s32.totalorder %s3946_s24, 3 }
  0x2d   : > { %p232_p3 = pnand %p2732_p9, %p231_p1 }
  0x2f   : > { %235 = sbr.rel (%p232_p3) target bundleno = 1538 (0x602), region = 44 }
  0x34   : > { %s4088_s29 = sand.u32 1, %s3938_s22   ;;  %p5921_p6 = scmp.ne.s32.totalorder %s5917_s8, 0 }
  0x35   : > { %s2733_s12 = sshll.u32 %s4088_s29, 9  ;;  %s238_s7 = scalar_lea.sflag [#allocation3], %s4088_s29 }
  0x36   : > { %s4092_s13 = scalar_lea.vmem [#allocation2], %s2733_s12 }
  0x37   : > { %3925 = dma.done.wait (%p5921_p6), %s238_s7, 8192  }
  0x38   : > { %3927 = vsyncadd (%p5921_p6), %s238_s7, 4294959104  ;;  %v4101_v0 = vld [vmem:[%s5848_s1 + $0x78] sm:$0xff]  ;;  %v4106_v1 = vld [vmem:[%s5848_s1 + $0x70] sm:$0xff]  ;;  %vm736_vm0 = vcmask 261120   ;;  %vm3952_vm1 = vmmov 0   ;;  %s2734_s16 = sshll.u32 %s4088_s29, 8 }
  0x39   : > { %3340 = vmatprep.subr.mxu0 %v4101_v0  ;;  %3746 = vmatprep.subr.mxu1 %v4101_v0  ;;  %v4114_v2 = vld [vmem:[%s5848_s1 + $0x68] sm:$0xff]  ;;  %v4123_v3 = vld [vmem:[%s5848_s1 + $0x60] sm:$0xff]  ;;  %v4133_v5 = vld [vmem:[%s5848_s1 + $0x58] sm:$0xff]  ;;  %s5703_s18 = scalar_lea.vmem [#allocation5], %s2734_s16  ;;  %s2914_s19 = sshll.u32 %s4012_s25, 12 }
  0x3a   : > { %3341 = vmatpush3.msra.mxu0 %v4101_v0  ;;  %3762 = vmatpush3.msra.mxu1 %v4101_v0  ;;  %v271_v4 = vld [vmem:[%s4092_s13] sm:$0xff]  ;;  %v4141_v6 = vld [vmem:[%s5848_s1 + $0x50] sm:$0xff]  ;;  %v4150_v7 = vld [vmem:[%s5848_s1 + $0x48] sm:$0xff]  ;;  %s2653_s20 = sshll.u32 %s5703_s18, 4  ;;  %s2640_s25 = scalar_lea.sflag [#allocation4], %s4088_s29  ;;  %s5802_s20 = int_to_ptr.vmem [resolvable:$true] %s2653_s20 }
  0x3b   : > { %3342 = vmatprep.subr.mxu0 %v4106_v1  ;;  %3747 = vmatprep.subr.mxu1 %v4106_v1  ;;  %v4159_v8 = vld [vmem:[%s5848_s1 + $0x40] sm:$0xff]  ;;  %v4168_v9 = vld [vmem:[%s5848_s1 + $0x38] sm:$0xff]  ;;  %v4177_v10 = vld [vmem:[%s5848_s1 + $0x30] sm:$0xff]  ;;  %s3882_s14 = scalar_lea.vmem %s5802_s20, 4096  ;;  %p6042_p12 = scmp.ne.s32.totalorder %s5918_s9, 0 }
  0x3c   : > { %3343 = vmatpush3.msra.mxu0 %v4106_v1  ;;  %3763 = vmatpush3.msra.mxu1 %v4106_v1  ;;  %v4186_v11 = vld [vmem:[%s5848_s1 + $0x28] sm:$0xff]  ;;  %v4195_v12 = vld [vmem:[%s5848_s1 + $0x20] sm:$0xff]  ;;  %v4204_v13 = vld [vmem:[%s5848_s1 + $0x18] sm:$0xff]  ;;  %p3883_p11 = scmp.ne.s32.totalorder %s5802_s20, %s3882_s14  ;;  %s3953_s15 = smov [#allocation5]  }
  0x3d   : > { %3344 = vmatprep.subr.mxu0 %v4114_v2  ;;  %3748 = vmatprep.subr.mxu1 %v4114_v2  ;;  %v4213_v14 = vld [vmem:[%s5848_s1 + $0x10] sm:$0xff]  ;;  %v4222_v15 = vld [vmem:[%s5848_s1 + $0x8] sm:$0xff]  ;;  %v4229_v16 = vld [vmem:[%s5848_s1] sm:$0xff]  ;;  %s3886_s17 = sshll.u32 %s3953_s15, 4  ;;  %s3887_s17 = int_to_ptr.vmem [resolvable:$false] %s3886_s17 }
  0x3e   : > { %3345 = vmatpush3.msra.mxu0 %v4114_v2  ;;  %3372 = vmatprep.mubr.f32.mxu0 %v271_v4  ;;  %v4234_v17 = vld [vmem:[%s4092_s13 + $0x8] sm:$0xff]  ;;  %v4239_v18 = vld [vmem:[%s4092_s13 + $0x10] sm:$0xff]  ;;  %v303_v19 = vld [vmem:[%s4092_s13 + $0x100] sm:$0xff]  ;;  %p3884_p13 = pnand %p3883_p11, %p6042_p12  ;;  %s3888_s26 = scalar_lea.vmem %s3887_s17, 8192 }
  0x3f   : > { %3346 = vmatprep.subr.mxu0 %v4123_v3  ;;  %3764 = vmatpush3.msra.mxu1 %v4114_v2  ;;  %v304_v20 = vld [vmem:[%s4092_s13 + $0x108] sm:$0xff]  ;;  %v305_v21 = vld [vmem:[%s4092_s13 + $0x110] sm:$0xff]  ;;  %v4255_v22 = vld [vmem:[%s4092_s13 + $0x18] sm:$0xff]  ;;  %p3889_p5 = scmp.lt.s32.totalorder %s5802_s20, %s3887_s17  ;;  %p3890_p7 = scmp.lt.s32.totalorder %s3888_s26, %s3882_s14 }
  0x40   : > { %3347 = vmatpush3.msra.mxu0 %v4123_v3  ;;  %3749 = vmatprep.subr.mxu1 %v4123_v3  ;;  %v4258_v23 = vld [vmem:[%s4092_s13 + $0x20] sm:$0xff]  ;;  %v306_v24 = vld [vmem:[%s4092_s13 + $0x118] sm:$0xff]  ;;  %v4265_v26 = vld [vmem:[%s4092_s13 + $0x28] sm:$0xff]  ;;  %p3885_p4 = pneg %p3884_p13 }
  0x41   : > { %3348 = vmatprep.subr.mxu0 %v4133_v5  ;;  %3765 = vmatpush3.msra.mxu1 %v4123_v3  ;;  %v307_v25 = vld [vmem:[%s4092_s13 + $0x120] sm:$0xff]  ;;  %v4268_v27 = vld [vmem:[%s4092_s13 + $0x30] sm:$0xff]  ;;  %v308_v28 = vld [vmem:[%s4092_s13 + $0x128] sm:$0xff]  ;;  %p3891_p8 = por %p3890_p7, %p3889_p5 }
  0x42   : > { %3349 = vmatpush3.msra.mxu0 %v4133_v5  ;;  %3750 = vmatprep.subr.mxu1 %v4133_v5  ;;  %v309_v29 = vld [vmem:[%s4092_s13 + $0x130] sm:$0xff]  ;;  %v4275_v30 = vld [vmem:[%s4092_s13 + $0x38] sm:$0xff]  ;;  %v4278_v31 = vld [vmem:[%s4092_s13 + $0x40] sm:$0xff] }
  0x43   : > { %3350 = vmatprep.subr.mxu0 %v4141_v6  ;;  %3766 = vmatpush3.msra.mxu1 %v4133_v5  ;;  %v310_v32 = vld [vmem:[%s4092_s13 + $0x138] sm:$0xff]  ;;  %v311_v33 = vld [vmem:[%s4092_s13 + $0x140] sm:$0xff]  ;;  %v4285_v34 = vld [vmem:[%s4092_s13 + $0x48] sm:$0xff]  ;;  %p3892_p10 = pnand %p3891_p8, %p3885_p4 }
  0x44   : > { %3351 = vmatpush3.msra.mxu0 %v4141_v6  ;;  %3751 = vmatprep.subr.mxu1 %v4141_v6  ;;  %v4288_v35 = vld [vmem:[%s4092_s13 + $0x50] sm:$0xff]  ;;  %v312_v36 = vld [vmem:[%s4092_s13 + $0x148] sm:$0xff]  ;;  %v4295_v38 = vld [vmem:[%s4092_s13 + $0x58] sm:$0xff] }
  0x45   : > { %3352 = vmatprep.subr.mxu0 %v4150_v7  ;;  %3767 = vmatpush3.msra.mxu1 %v4141_v6  ;;  %v313_v37 = vld [vmem:[%s4092_s13 + $0x150] sm:$0xff]  ;;  %v4298_v39 = vld [vmem:[%s4092_s13 + $0x60] sm:$0xff]  ;;  %v314_v40 = vld [vmem:[%s4092_s13 + $0x158] sm:$0xff] }
  0x46   : > { %3353 = vmatpush3.msra.mxu0 %v4150_v7  ;;  %3752 = vmatprep.subr.mxu1 %v4150_v7  ;;  %v315_v41 = vld [vmem:[%s4092_s13 + $0x160] sm:$0xff]  ;;  %v4305_v42 = vld [vmem:[%s4092_s13 + $0x68] sm:$0xff]  ;;  %v4308_v43 = vld [vmem:[%s4092_s13 + $0x70] sm:$0xff] }
  0x47   : > { %3354 = vmatprep.subr.mxu0 %v4159_v8  ;;  %3768 = vmatpush3.msra.mxu1 %v4150_v7  ;;  %v4311_v44 = vld [vmem:[%s4092_s13 + $0x168] sm:$0xff]  ;;  %v4315_v45 = vld [vmem:[%s4092_s13 + $0x170] sm:$0xff]  ;;  %v4319_v46 = vld [vmem:[%s4092_s13 + $0x78] sm:$0xff] }
  0x48   : > { %3355 = vmatpush3.msra.mxu0 %v4159_v8  ;;  %3753 = vmatprep.subr.mxu1 %v4159_v8  ;;  %5922 = vst [vmem:[#allocation8_spill] sm:$0xff] %v4311_v44  ;;  %5923 = vst [vmem:[#allocation9_spill] sm:$0xff] %v4315_v45  ;;  %v4322_v47 = vld [vmem:[%s4092_s13 + $0x80] sm:$0xff]  ;;  %v4327_v48 = vld [vmem:[%s4092_s13 + $0x178] sm:$0xff] }
  0x49   : > { %3356 = vmatprep.subr.mxu0 %v4168_v9  ;;  %3769 = vmatpush3.msra.mxu1 %v4159_v8  ;;  %5924 = vst [vmem:[#allocation10_spill] sm:$0xff] %v4322_v47  ;;  %5925 = vst [vmem:[#allocation11_spill] sm:$0xff] %v4327_v48  ;;  %v4331_v49 = vld [vmem:[%s4092_s13 + $0x180] sm:$0xff]  ;;  %v4335_v50 = vld [vmem:[%s4092_s13 + $0x88] sm:$0xff] }
  0x4a   : > { %3357 = vmatpush3.msra.mxu0 %v4168_v9  ;;  %3754 = vmatprep.subr.mxu1 %v4168_v9  ;;  %5926 = vst [vmem:[#allocation12_spill] sm:$0xff] %v4331_v49  ;;  %5927 = vst [vmem:[#allocation13_spill] sm:$0xff] %v4335_v50  ;;  %v4338_v51 = vld [vmem:[%s4092_s13 + $0x90] sm:$0xff]  ;;  %v4343_v52 = vld [vmem:[%s4092_s13 + $0x188] sm:$0xff] }
  0x4b   : > { %3358 = vmatprep.subr.mxu0 %v4177_v10  ;;  %3770 = vmatpush3.msra.mxu1 %v4168_v9  ;;  %5928 = vst [vmem:[#allocation14_spill] sm:$0xff] %v4338_v51  ;;  %5929 = vst [vmem:[#allocation15_spill] sm:$0xff] %v4343_v52  ;;  %v4347_v53 = vld [vmem:[%s4092_s13 + $0x190] sm:$0xff]  ;;  %v4351_v54 = vld [vmem:[%s4092_s13 + $0x98] sm:$0xff] }
  0x4c   : > { %3359 = vmatpush3.msra.mxu0 %v4177_v10  ;;  %3755 = vmatprep.subr.mxu1 %v4177_v10  ;;  %5930 = vst [vmem:[#allocation16_spill] sm:$0xff] %v4347_v53  ;;  %5931 = vst [vmem:[#allocation17_spill] sm:$0xff] %v4351_v54  ;;  %v4354_v55 = vld [vmem:[%s4092_s13 + $0xa0] sm:$0xff]  ;;  %v4359_v56 = vld [vmem:[%s4092_s13 + $0x198] sm:$0xff] }
  0x4d   : > { %3360 = vmatprep.subr.mxu0 %v4186_v11  ;;  %3771 = vmatpush3.msra.mxu1 %v4177_v10  ;;  %5932 = vst [vmem:[#allocation18_spill] sm:$0xff] %v4354_v55  ;;  %5933 = vst [vmem:[#allocation19_spill] sm:$0xff] %v4359_v56  ;;  %v4363_v57 = vld [vmem:[%s4092_s13 + $0x1a0] sm:$0xff]  ;;  %v4367_v58 = vld [vmem:[%s4092_s13 + $0xa8] sm:$0xff] }
  0x4e   : > { %3361 = vmatpush3.msra.mxu0 %v4186_v11  ;;  %3756 = vmatprep.subr.mxu1 %v4186_v11  ;;  %5934 = vst [vmem:[#allocation20_spill] sm:$0xff] %v4363_v57  ;;  %5935 = vst [vmem:[#allocation21_spill] sm:$0xff] %v4367_v58  ;;  %v4370_v59 = vld [vmem:[%s4092_s13 + $0xb0] sm:$0xff]  ;;  %v4375_v60 = vld [vmem:[%s4092_s13 + $0x1a8] sm:$0xff] }
  0x4f   : > { %3362 = vmatprep.subr.mxu0 %v4195_v12  ;;  %3772 = vmatpush3.msra.mxu1 %v4186_v11  ;;  %5936 = vst [vmem:[#allocation22_spill] sm:$0xff] %v4370_v59  ;;  %5937 = vst [vmem:[#allocation23_spill] sm:$0xff] %v4375_v60  ;;  %v4379_v61 = vld [vmem:[%s4092_s13 + $0x1b0] sm:$0xff]  ;;  %v4383_v62 = vld [vmem:[%s4092_s13 + $0xb8] sm:$0xff] }
  0x50   : > { %3363 = vmatpush3.msra.mxu0 %v4195_v12  ;;  %3757 = vmatprep.subr.mxu1 %v4195_v12  ;;  %5938 = vst [vmem:[#allocation24_spill] sm:$0xff] %v4379_v61  ;;  %5939 = vst [vmem:[#allocation25_spill] sm:$0xff] %v4383_v62  ;;  %v4386_v63 = vld [vmem:[%s4092_s13 + $0xc0] sm:$0xff]  ;;  %v4391_v4 = vld [vmem:[%s4092_s13 + $0x1b8] sm:$0xff] }
  0x51   : > { %3364 = vmatprep.subr.mxu0 %v4204_v13  ;;  %3773 = vmatpush3.msra.mxu1 %v4195_v12  ;;  %5940 = vst [vmem:[#allocation26_spill] sm:$0xff] %v4386_v63  ;;  %5941 = vst [vmem:[#allocation27_spill] sm:$0xff] %v4391_v4 }
  0x52   : > { %3365 = vmatpush3.msra.mxu0 %v4204_v13  ;;  %3758 = vmatprep.subr.mxu1 %v4204_v13 }
  0x53   : > { %3366 = vmatprep.subr.mxu0 %v4213_v14  ;;  %3774 = vmatpush3.msra.mxu1 %v4204_v13 }
  0x54   : > { %3367 = vmatpush3.msra.mxu0 %v4213_v14  ;;  %3759 = vmatprep.subr.mxu1 %v4213_v14 }
  0x55   : > { %3368 = vmatprep.subr.mxu0 %v4222_v15  ;;  %3775 = vmatpush3.msra.mxu1 %v4213_v14 }
  0x56   : > { %3369 = vmatpush3.msra.mxu0 %v4222_v15  ;;  %3760 = vmatprep.subr.mxu1 %v4222_v15 }
  0x57   : > { %3370 = vmatprep.subr.mxu0 %v4229_v16  ;;  %3776 = vmatpush3.msra.mxu1 %v4222_v15 }
  0x58   : > { %3371 = vmatpush3.msra.mxu0 %v4229_v16  ;;  %3761 = vmatprep.subr.mxu1 %v4229_v16 }
  0x59   : > { %3373 = vmatmul.mubr.f32.vlgmr.msra.gmra.mxu0 %v4234_v17  ;;  %3777 = vmatpush3.msra.mxu1 %v4229_v16 }
  0x5a   : > { %3375 = vmatprep.mubr.f32.mxu0 %v4239_v18  ;;  %3420 = vmatprep.mubr.f32.mxu1 %v303_v19  ;;  %v4395_v19 = vld [vmem:[%s4092_s13 + $0x1c0] sm:$0xff] }
  0x5b   : > { %3421 = vmatmul.mubr.f32.vlgmr.msra.gmra.mxu1 %v304_v20  ;;  %5942 = vst [vmem:[#allocation28_spill] sm:$0xff] %v4395_v19  ;;  %v4399_v20 = vld [vmem:[%s4092_s13 + $0xc8] sm:$0xff] }
  0x5c   : > { %3423 = vmatprep.mubr.f32.mxu1 %v305_v21  ;;  %5943 = vst [vmem:[#allocation29_spill] sm:$0xff] %v4399_v20  ;;  %v4402_v21 = vld [vmem:[%s4092_s13 + $0xd0] sm:$0xff] }
  0x5d   : > { %3376 = vmatmul.mubr.f32.gmra.mxu0 %v4255_v22  ;;  %5944 = vst [vmem:[#allocation30_spill] sm:$0xff] %v4402_v21 }
  0x5e   : > { %3378 = vmatprep.mubr.f32.mxu0 %v4258_v23 }
  0x5f   : > { %3424 = vmatmul.mubr.f32.gmra.mxu1 %v306_v24  ;;  %v4407_v24 = vld [vmem:[%s4092_s13 + $0x1c8] sm:$0xff] }
  0x60   : > { %3426 = vmatprep.mubr.f32.mxu1 %v307_v25  ;;  %5945 = vst [vmem:[#allocation31_spill] sm:$0xff] %v4407_v24  ;;  %v4411_v25 = vld [vmem:[%s4092_s13 + $0x1d0] sm:$0xff] }
  0x61   : > { %3379 = vmatmul.mubr.f32.gmra.mxu0 %v4265_v26  ;;  %5946 = vst [vmem:[#allocation32_spill] sm:$0xff] %v4411_v25 }
  0x62   : > { %3381 = vmatprep.mubr.f32.mxu0 %v4268_v27 }
  0x63   : > { %3427 = vmatmul.mubr.f32.gmra.mxu1 %v308_v28  ;;  %v4415_v28 = vld [vmem:[%s4092_s13 + $0xd8] sm:$0xff] }
  0x64   : > { %3429 = vmatprep.mubr.f32.mxu1 %v309_v29  ;;  %5947 = vst [vmem:[#allocation33_spill] sm:$0xff] %v4415_v28  ;;  %v4418_v29 = vld [vmem:[%s4092_s13 + $0xe0] sm:$0xff] }
  0x65   : > { %3382 = vmatmul.mubr.f32.gmra.mxu0 %v4275_v30  ;;  %5948 = vst [vmem:[#allocation34_spill] sm:$0xff] %v4418_v29 }
  0x66   : > { %3384 = vmatprep.mubr.f32.mxu0 %v4278_v31 }
  0x67   : > { %3430 = vmatmul.mubr.f32.gmra.mxu1 %v310_v32  ;;  %v4423_v32 = vld [vmem:[%s4092_s13 + $0x1d8] sm:$0xff] }
  0x68   : > { %3432 = vmatprep.mubr.f32.mxu1 %v311_v33  ;;  %5949 = vst [vmem:[#allocation35_spill] sm:$0xff] %v4423_v32  ;;  %v4427_v33 = vld [vmem:[%s4092_s13 + $0x1e0] sm:$0xff] }
  0x69   : > { %3385 = vmatmul.mubr.f32.gmra.mxu0 %v4285_v34  ;;  %5950 = vst [vmem:[#allocation36_spill] sm:$0xff] %v4427_v33 }
  0x6a   : > { %3387 = vmatprep.mubr.f32.mxu0 %v4288_v35 }
  0x6b   : > { %3433 = vmatmul.mubr.f32.gmra.mxu1 %v312_v36  ;;  %v4431_v36 = vld [vmem:[%s4092_s13 + $0xe8] sm:$0xff] }
  0x6c   : > { %3435 = vmatprep.mubr.f32.mxu1 %v313_v37  ;;  %5951 = vst [vmem:[#allocation37_spill] sm:$0xff] %v4431_v36  ;;  %v4434_v37 = vld [vmem:[%s4092_s13 + $0xf0] sm:$0xff] }
  0x6d   : > { %3388 = vmatmul.mubr.f32.gmra.mxu0 %v4295_v38  ;;  %5952 = vst [vmem:[#allocation38_spill] sm:$0xff] %v4434_v37 }
  0x6e   : > { %3390 = vmatprep.mubr.f32.mxu0 %v4298_v39 }
  0x6f   : > { %3436 = vmatmul.mubr.f32.gmra.mxu1 %v314_v40  ;;  %v4439_v40 = vld [vmem:[%s4092_s13 + $0x1e8] sm:$0xff] }
  0x70   : > { %3438 = vmatprep.mubr.f32.mxu1 %v315_v41  ;;  %5953 = vst [vmem:[#allocation39_spill] sm:$0xff] %v4439_v40  ;;  %v4443_v41 = vld [vmem:[%s4092_s13 + $0x1f0] sm:$0xff] }
  0x71   : > { %3391 = vmatmul.mubr.f32.gmra.mxu0 %v4305_v42  ;;  %5954 = vst [vmem:[#allocation40_spill] sm:$0xff] %v4443_v41 }
  0x72   : > { %3393 = vmatprep.mubr.f32.mxu0 %v4308_v43 }
  0x73   : > { %3439 = vmatmul.mubr.f32.gmra.mxu1 %v4311_v44 }
  0x74   : > { %3441 = vmatprep.mubr.f32.mxu1 %v4315_v45 }
  0x75   : > { %3394 = vmatmul.mubr.f32.gmra.mxu0 %v4319_v46 }
  0x76   : > { %3396 = vmatprep.mubr.f32.mxu0 %v4322_v47 }
  0x77   : > { %3442 = vmatmul.mubr.f32.gmra.mxu1 %v4327_v48 }
  0x78   : > { %3444 = vmatprep.mubr.f32.mxu1 %v4331_v49 }
  0x79   : > { %3397 = vmatmul.mubr.f32.gmra.mxu0 %v4335_v50 }
  0x7a   : > { %3399 = vmatprep.mubr.f32.mxu0 %v4338_v51 }
  0x7b   : > { %3445 = vmatmul.mubr.f32.gmra.mxu1 %v4343_v52 }
  0x7c   : > { %3447 = vmatprep.mubr.f32.mxu1 %v4347_v53 }
  0x7d   : > { %3400 = vmatmul.mubr.f32.gmra.mxu0 %v4351_v54 }
  0x7e   : > { %3402 = vmatprep.mubr.f32.mxu0 %v4354_v55 }
  0x7f   : > { %3448 = vmatmul.mubr.f32.gmra.mxu1 %v4359_v56 }
  0x80   : > { %3450 = vmatprep.mubr.f32.mxu1 %v4363_v57 }
  0x81   : > { %3403 = vmatmul.mubr.f32.gmra.mxu0 %v4367_v58 }
  0x82   : > { %3405 = vmatprep.mubr.f32.mxu0 %v4370_v59 }
  0x83   : > { %3451 = vmatmul.mubr.f32.gmra.mxu1 %v4375_v60 }
  0x84   : > { %3453 = vmatprep.mubr.f32.mxu1 %v4379_v61 }
  0x85   : > { %3406 = vmatmul.mubr.f32.gmra.mxu0 %v4383_v62 }
  0x86   : > { %3408 = vmatprep.mubr.f32.mxu0 %v4386_v63 }
  0x87   : > { %3454 = vmatmul.mubr.f32.gmra.mxu1 %v4391_v4 }
  0x88   : > { %3456 = vmatprep.mubr.f32.mxu1 %v4395_v19 }
  0x89   : > { %3409 = vmatmul.mubr.f32.gmra.mxu0 %v4399_v20 }
  0x8a   : > { %3411 = vmatprep.mubr.f32.mxu0 %v4402_v21 }
  0x8b   : > { %3457 = vmatmul.mubr.f32.gmra.mxu1 %v4407_v24  ;;  %v4452_v24 = vld [vmem:[%s4092_s13 + $0x1f8] sm:$0xff] }
  0x8c   : > { %3459 = vmatprep.mubr.f32.mxu1 %v4411_v25  ;;  %v4447_v25 = vld [vmem:[%s4092_s13 + $0xf8] sm:$0xff]  ;;  %5956 = vst [vmem:[#allocation42_spill] sm:$0xff] %v4452_v24 }
  0x8d   : > { %3412 = vmatmul.mubr.f32.gmra.mxu0 %v4415_v28  ;;  %5955 = vst [vmem:[#allocation41_spill] sm:$0xff] %v4447_v25 }
  0x8e   : > { %3414 = vmatprep.mubr.f32.mxu0 %v4418_v29 }
  0x8f   : > { %3460 = vmatmul.mubr.f32.gmra.mxu1 %v4423_v32 }
  0x90   : > { %3462 = vmatprep.mubr.f32.mxu1 %v4427_v33  ;;  %v5873_v33 = vmov 0.0  }
  0x91   : > { %3415 = vmatmul.mubr.f32.gmra.mxu0 %v4431_v36  ;;  %3468 = vmatprep.subr.mxu1 %v5873_v33 }
  0x92   : > { %3417 = vmatprep.mubr.f32.mxu0 %v4434_v37  ;;  %3631 = vmatprep.subr.mxu0 %v5873_v33 }
  0x93   : > { %3463 = vmatmul.mubr.f32.gmra.mxu1 %v4439_v40  ;;  %3632 = vmatpush3.xpose.msk.msra.mxu0 %vm736_vm0, %v4101_v0 }
  0x94   : > { %3465 = vmatprep.mubr.f32.mxu1 %v4443_v41  ;;  %3469 = vmatpush3.xpose.msk.msra.mxu1 %vm736_vm0, %v4101_v0 }
  0x95   : > { %3418 = vmatmul.mubr.f32.gmra.mxu0 %v4447_v25  ;;  %3470 = vmatprep.subr.mxu1 %v5873_v33 }
  0x96   : > { %3633 = vmatprep.subr.mxu0 %v5873_v33 }
  0x97   : > { %3466 = vmatmul.mubr.f32.gmra.mxu1 %v4452_v24  ;;  %3634 = vmatpush3.xpose.msk.msra.mxu0 %vm736_vm0, %v4106_v1 }
  0x98   : > { %3471 = vmatpush3.xpose.msk.msra.mxu1 %vm736_vm0, %v4106_v1  ;;  %3635 = vmatprep.subr.mxu0 %v5873_v33 }
  0x99   : > { %3472 = vmatprep.subr.mxu1 %v5873_v33 }
  0x9b   : > { %3636 = vmatpush3.xpose.msk.msra.mxu0 %vm736_vm0, %v4114_v2 }
  0x9c   : > { %3473 = vmatpush3.xpose.msk.msra.mxu1 %vm736_vm0, %v4114_v2  ;;  %3637 = vmatprep.subr.mxu0 %v5873_v33 }
  0x9d   : > { %3474 = vmatprep.subr.mxu1 %v5873_v33 }
  0x9f   : > { %3638 = vmatpush3.xpose.msk.msra.mxu0 %vm736_vm0, %v4123_v3 }
  0xa0   : > { %3475 = vmatpush3.xpose.msk.msra.mxu1 %vm736_vm0, %v4123_v3  ;;  %3639 = vmatprep.subr.mxu0 %v5873_v33 }
  0xa1   : > { %3476 = vmatprep.subr.mxu1 %v5873_v33 }
  0xa3   : > { %3640 = vmatpush3.xpose.msk.msra.mxu0 %vm736_vm0, %v4133_v5 }
  0xa4   : > { %3477 = vmatpush3.xpose.msk.msra.mxu1 %vm736_vm0, %v4133_v5  ;;  %3641 = vmatprep.subr.mxu0 %v5873_v33 }
  0xa5   : > { %3478 = vmatprep.subr.mxu1 %v5873_v33 }
  0xa7   : > { %3642 = vmatpush3.xpose.msk.msra.mxu0 %vm736_vm0, %v4141_v6 }
  0xa8   : > { %3479 = vmatpush3.xpose.msk.msra.mxu1 %vm736_vm0, %v4141_v6  ;;  %3643 = vmatprep.subr.mxu0 %v5873_v33 }
  0xa9   : > { %3480 = vmatprep.subr.mxu1 %v5873_v33 }
  0xab   : > { %3644 = vmatpush3.xpose.msk.msra.mxu0 %vm736_vm0, %v4150_v7 }
  0xac   : > { %3481 = vmatpush3.xpose.msk.msra.mxu1 %vm736_vm0, %v4150_v7  ;;  %3645 = vmatprep.subr.mxu0 %v5873_v33 }
  0xad   : > { %3482 = vmatprep.subr.mxu1 %v5873_v33 }
  0xaf   : > { %3646 = vmatpush3.xpose.msk.msra.mxu0 %vm736_vm0, %v4159_v8 }
  0xb0   : > { %3483 = vmatpush3.xpose.msk.msra.mxu1 %vm736_vm0, %v4159_v8  ;;  %3647 = vmatprep.subr.mxu0 %v5873_v33 }
  0xb1   : > { %3484 = vmatprep.subr.mxu1 %v5873_v33 }
  0xb3   : > { %3648 = vmatpush3.xpose.msk.msra.mxu0 %vm736_vm0, %v4168_v9 }
  0xb4   : > { %3485 = vmatpush3.xpose.msk.msra.mxu1 %vm736_vm0, %v4168_v9  ;;  %3649 = vmatprep.subr.mxu0 %v5873_v33 }
  0xb5   : > { %3486 = vmatprep.subr.mxu1 %v5873_v33 }
  0xb7   : > { %3650 = vmatpush3.xpose.msk.msra.mxu0 %vm736_vm0, %v4177_v10 }
  0xb8   : > { %3487 = vmatpush3.xpose.msk.msra.mxu1 %vm736_vm0, %v4177_v10  ;;  %3651 = vmatprep.subr.mxu0 %v5873_v33 }
  0xb9   : > { %3488 = vmatprep.subr.mxu1 %v5873_v33 }
  0xbb   : > { %3652 = vmatpush3.xpose.msk.msra.mxu0 %vm736_vm0, %v4186_v11 }
  0xbc   : > { %3489 = vmatpush3.xpose.msk.msra.mxu1 %vm736_vm0, %v4186_v11  ;;  %3653 = vmatprep.subr.mxu0 %v5873_v33 }
  0xbd   : > { %3490 = vmatprep.subr.mxu1 %v5873_v33 }
  0xbf   : > { %3654 = vmatpush3.xpose.msk.msra.mxu0 %vm736_vm0, %v4195_v12 }
  0xc0   : > { %3491 = vmatpush3.xpose.msk.msra.mxu1 %vm736_vm0, %v4195_v12  ;;  %3655 = vmatprep.subr.mxu0 %v5873_v33 }
  0xc1   : > { %3492 = vmatprep.subr.mxu1 %v5873_v33 }
  0xc3   : > { %3656 = vmatpush3.xpose.msk.msra.mxu0 %vm736_vm0, %v4204_v13 }
  0xc4   : > { %3493 = vmatpush3.xpose.msk.msra.mxu1 %vm736_vm0, %v4204_v13  ;;  %3657 = vmatprep.subr.mxu0 %v5873_v33 }
  0xc5   : > { %3494 = vmatprep.subr.mxu1 %v5873_v33 }
  0xc7   : > { %3658 = vmatpush3.xpose.msk.msra.mxu0 %vm736_vm0, %v4213_v14 }
  0xc8   : > { %3495 = vmatpush3.xpose.msk.msra.mxu1 %vm736_vm0, %v4213_v14  ;;  %3659 = vmatprep.subr.mxu0 %v5873_v33 }
  0xc9   : > { %3496 = vmatprep.subr.mxu1 %v5873_v33 }
  0xcb   : > { %3660 = vmatpush3.xpose.msk.msra.mxu0 %vm736_vm0, %v4222_v15 }
  0xcc   : > { %3497 = vmatpush3.xpose.msk.msra.mxu1 %vm736_vm0, %v4222_v15  ;;  %3661 = vmatprep.subr.mxu0 %v5873_v33 }
  0xcd   : > { %3498 = vmatprep.subr.mxu1 %v5873_v33 }
  0xcf   : > { %3662 = vmatpush3.xpose.msk.msra.mxu0 %vm736_vm0, %v4229_v16 }
  0xd0   : > { %3499 = vmatpush3.xpose.msk.msra.mxu1 %vm736_vm0, %v4229_v16 }
  0xd1   : > { %3503 = vmatprep.subr.mxu1 %v4101_v0 }
 0x119   : > { %v3374_v24 = vpop.f32.mrf.mxu0 }
 0x11a   : > { %v738_v61 = vsel %vm736_vm0, %v3374_v24, 0.0 }
 0x11b   : > { %v417_v41 = vpop.f32.mrf.mxu0  ;;  %v4530_v40 = vpop.f32.mrf.mxu1 }
 0x11c   : > { %v737_v32 = vsel %vm736_vm0, %v417_v41, 0.0 }
 0x11d   : > { %v3377_v19 = vpop.f32.mrf.mxu0  ;;  %v4537_v4 = vpop.f32.mrf.mxu1  ;;  %v739_v60 = vadd.f32 %v738_v61, %v737_v32 }
 0x11e   : > { %v742_v24 = vsel %vm736_vm0, %v3377_v19, 0.0 }
 0x11f   : > { %v427_v57 = vpop.f32.mrf.mxu0  ;;  %v4547_v52 = vpop.f32.mrf.mxu1 }
 0x120   : > { %v740_v56 = vsel %vm736_vm0, %v427_v57, 0.0 }
 0x121   : > { %v741_v41 = vadd.f32 %v740_v56, %v739_v60  ;;  %v3380_v53 = vpop.f32.mrf.mxu0  ;;  %v4557_v49 = vpop.f32.mrf.mxu1 }
 0x122   : > { %v746_v19 = vsel %vm736_vm0, %v3380_v53, 0.0  ;;  %v5957_v53 = vmov 0.0  }
 0x123   : > { %v743_v61 = vadd.f32 %v742_v24, %v741_v41  ;;  %v437_v32 = vpop.f32.mrf.mxu0  ;;  %v4567_v48 = vpop.f32.mrf.mxu1  ;;  %3500 = vmatprep.mubr.msk.f32.mxu1 %vm3952_vm1, %v5957_v53  ;;  %3663 = vmatprep.mubr.msk.f32.mxu0 %vm3952_vm1, %v5957_v53 }
 0x124   : > { %v744_v57 = vsel %vm736_vm0, %v437_v32, 0.0 }
 0x125   : > { %v745_v56 = vadd.f32 %v744_v57, %v743_v61  ;;  %v3383_v60 = vpop.f32.mrf.mxu0  ;;  %v4574_v25 = vpop.f32.mrf.mxu1 }
 0x126   : > { %v750_v33 = vsel %vm736_vm0, %v3383_v60, 0.0 }
 0x127   : > { %v447_v41 = vpop.f32.mrf.mxu0  ;;  %v747_v24 = vadd.f32 %v746_v19, %v745_v56  ;;  %v4578_v28 = vpop.f32.mrf.mxu1 }
 0x128   : > { %v748_v32 = vsel %vm736_vm0, %v447_v41, 0.0 }
 0x129   : > { %v749_v61 = vadd.f32 %v748_v32, %v747_v24  ;;  %v3386_v57 = vpop.f32.mrf.mxu0 }
 0x12a   : > { %v754_v24 = vsel %vm736_vm0, %v3386_v57, 0.0 }
 0x12b   : > { %v457_v56 = vpop.f32.mrf.mxu0  ;;  %v751_v19 = vadd.f32 %v750_v33, %v749_v61 }
 0x12c   : > { %v752_v41 = vsel %vm736_vm0, %v457_v56, 0.0 }
 0x12d   : > { %v753_v45 = vadd.f32 %v752_v41, %v751_v19  ;;  %v3389_v44 = vpop.f32.mrf.mxu0  ;;  %v4582_v41 = vpop.f32.mrf.mxu1 }
 0x12e   : > { %v758_v53 = vsel %vm736_vm0, %v3389_v44, 0.0 }
 0x12f   : > { %v467_v32 = vpop.f32.mrf.mxu0  ;;  %v755_v37 = vadd.f32 %v754_v24, %v753_v45 }
 0x130   : > { %v756_v36 = vsel %vm736_vm0, %v467_v32, 0.0  ;;  %v4586_v32 = vpop.f32.mrf.mxu1 }
 0x131   : > { %v757_v60 = vadd.f32 %v756_v36, %v755_v37  ;;  %v3392_v29 = vpop.f32.mrf.mxu0 }
 0x132   : > { %v762_v57 = vsel %vm736_vm0, %v3392_v29, 0.0 }
 0x133   : > { %v477_v21 = vpop.f32.mrf.mxu0  ;;  %v759_v33 = vadd.f32 %v758_v53, %v757_v60 }
 0x134   : > { %v760_v61 = vsel %vm736_vm0, %v477_v21, 0.0 }
 0x135   : > { %v761_v56 = vadd.f32 %v760_v61, %v759_v33  ;;  %v3395_v19 = vpop.f32.mrf.mxu0  ;;  %v4590_v61 = vpop.f32.mrf.mxu1 }
 0x136   : > { %v766_v44 = vsel %vm736_vm0, %v3395_v19, 0.0 }
 0x137   : > { %v487_v20 = vpop.f32.mrf.mxu0  ;;  %v763_v45 = vadd.f32 %v762_v57, %v761_v56 }
 0x138   : > { %v764_v24 = vsel %vm736_vm0, %v487_v20, 0.0 }
 0x139   : > { %v765_v36 = vadd.f32 %v764_v24, %v763_v45  ;;  %v3398_v37 = vpop.f32.mrf.mxu0  ;;  %v4594_v24 = vpop.f32.mrf.mxu1 }
 0x13a   : > { %v770_v29 = vsel %vm736_vm0, %v3398_v37, 0.0 }
 0x13b   : > { %v497_v63 = vpop.f32.mrf.mxu0  ;;  %v767_v60 = vadd.f32 %v766_v44, %v765_v36 }
 0x13c   : > { %v768_v21 = vsel %vm736_vm0, %v497_v63, 0.0 }
 0x13d   : > { %v769_v53 = vadd.f32 %v768_v21, %v767_v60  ;;  %v3401_v33 = vpop.f32.mrf.mxu0  ;;  %v627_v21 = vpop.f32.mrf.mxu1 }
 0x13e   : > { %v774_v19 = vsel %vm736_vm0, %v3401_v33, 0.0 }
 0x13f   : > { %v507_v62 = vpop.f32.mrf.mxu0  ;;  %v771_v56 = vadd.f32 %v770_v29, %v769_v53 }
 0x140   : > { %v772_v20 = vsel %vm736_vm0, %v507_v62, 0.0 }
 0x141   : > { %v773_v57 = vadd.f32 %v772_v20, %v771_v56  ;;  %v3404_v45 = vpop.f32.mrf.mxu0  ;;  %v4600_v56 = vpop.f32.mrf.mxu1 }
 0x142   : > { %v778_v58 = vsel %vm736_vm0, %v3404_v45, 0.0 }
 0x143   : > { %v517_v59 = vpop.f32.mrf.mxu0  ;;  %v775_v36 = vadd.f32 %v774_v19, %v773_v57 }
 0x144   : > { %v776_v63 = vsel %vm736_vm0, %v517_v59, 0.0 }
 0x145   : > { %v777_v44 = vadd.f32 %v776_v63, %v775_v36  ;;  %v3407_v60 = vpop.f32.mrf.mxu0  ;;  %v637_v36 = vpop.f32.mrf.mxu1 }
 0x146   : > { %v782_v20 = vsel %vm736_vm0, %v3407_v60, 0.0 }
 0x147   : > { %v527_v37 = vpop.f32.mrf.mxu0  ;;  %v779_v55 = vadd.f32 %v778_v58, %v777_v44 }
 0x148   : > { %v780_v53 = vsel %vm736_vm0, %v527_v37, 0.0  ;;  %v3443_v37 = vpop.f32.mrf.mxu1 }
 0x149   : > { %v781_v62 = vadd.f32 %v780_v53, %v779_v55  ;;  %v3410_v29 = vpop.f32.mrf.mxu0 }
 0x14a   : > { %v786_v63 = vsel %vm736_vm0, %v3410_v29, 0.0 }
 0x14b   : > { %v537_v33 = vpop.f32.mrf.mxu0  ;;  %v783_v54 = vadd.f32 %v782_v20, %v781_v62 }
 0x14c   : > { %v784_v57 = vsel %vm736_vm0, %v537_v33, 0.0 }
 0x14d   : > { %v785_v59 = vadd.f32 %v784_v57, %v783_v54  ;;  %v3413_v19 = vpop.f32.mrf.mxu0  ;;  %v647_v54 = vpop.f32.mrf.mxu1 }
 0x14e   : > { %v790_v53 = vsel %vm736_vm0, %v3413_v19, 0.0  ;;  %v800_v19 = vsel %vm736_vm0, %v4537_v4, 0.0 }
 0x14f   : > { %v547_v45 = vpop.f32.mrf.mxu0  ;;  %v787_v51 = vadd.f32 %v786_v63, %v785_v59 }
 0x150   : > { %v788_v58 = vsel %vm736_vm0, %v547_v45, 0.0  ;;  %v3446_v45 = vpop.f32.mrf.mxu1 }
 0x151   : > { %v789_v44 = vadd.f32 %v788_v58, %v787_v51  ;;  %v3416_v55 = vpop.f32.mrf.mxu0 }
 0x152   : > { %v794_v57 = vsel %vm736_vm0, %v3416_v55, 0.0  ;;  %v804_v55 = vsel %vm736_vm0, %v4557_v49, 0.0 }
 0x153   : > { %v557_v50 = vpop.f32.mrf.mxu0  ;;  %v791_v60 = vadd.f32 %v790_v53, %v789_v44  ;;  %v657_v53 = vpop.f32.mrf.mxu1 }
 0x154   : > { %v792_v62 = vsel %vm736_vm0, %v557_v50, 0.0  ;;  %v802_v50 = vsel %vm736_vm0, %v4530_v40, 0.0  ;;  %v812_v40 = vsel %vm736_vm0, %v4582_v41, 0.0  ;;  %v822_v41 = vsel %vm736_vm0, %v4594_v24, 0.0 }
 0x155   : > { %v793_v20 = vadd.f32 %v792_v62, %v791_v60  ;;  %v3419_v33 = vpop.f32.mrf.mxu0 }
 0x156   : > { %v798_v51 = vsel %vm736_vm0, %v3419_v33, 0.0  ;;  %v808_v33 = vsel %vm736_vm0, %v4574_v25, 0.0 }
 0x157   : > { %v567_v47 = vpop.f32.mrf.mxu0  ;;  %v795_v29 = vadd.f32 %v794_v57, %v793_v20  ;;  %v3449_v20 = vpop.f32.mrf.mxu1 }
 0x158   : > { %v796_v59 = vsel %vm736_vm0, %v567_v47, 0.0  ;;  %v806_v47 = vsel %vm736_vm0, %v4547_v52, 0.0  ;;  %v816_v52 = vsel %vm736_vm0, %v4590_v61, 0.0  ;;  %v826_v61 = vsel %vm736_vm0, %v4600_v56, 0.0 }
 0x159   : > { %v797_v63 = vadd.f32 %v796_v59, %v795_v29  ;;  %v667_v4 = vpop.f32.mrf.mxu1  ;;  %v810_v59 = vsel %vm736_vm0, %v4567_v48, 0.0  ;;  %v820_v48 = vsel %vm736_vm0, %v627_v21, 0.0  ;;  %v830_v21 = vsel %vm736_vm0, %v3443_v37, 0.0 }
 0x15a   : > { %v838_v56 = vsel %vm736_vm0, %v3449_v20, 0.0 }
 0x15b   : > { %v799_v58 = vadd.f32 %v798_v51, %v797_v63  ;;  %v3452_v49 = vpop.f32.mrf.mxu1 }
 0x15c   : > { %v842_v37 = vsel %vm736_vm0, %v3452_v49, 0.0 }
 0x15d   : > { %v801_v44 = vadd.f32 %v800_v19, %v799_v58  ;;  %v814_v58 = vsel %vm736_vm0, %v4578_v28, 0.0  ;;  %v677_v25 = vpop.f32.mrf.mxu1  ;;  %v824_v28 = vsel %vm736_vm0, %v637_v36, 0.0 }
 0x15f   : > { %v803_v60 = vadd.f32 %v802_v50, %v801_v44  ;;  %v818_v50 = vsel %vm736_vm0, %v4586_v32, 0.0 }
 0x161   : > { %v805_v62 = vadd.f32 %v804_v55, %v803_v60 }
 0x163   : > { %v807_v57 = vadd.f32 %v806_v47, %v805_v62  ;;  %v3455_v62 = vpop.f32.mrf.mxu1 }
 0x165   : > { %v809_v29 = vadd.f32 %v808_v33, %v807_v57  ;;  %v687_v33 = vpop.f32.mrf.mxu1 }
 0x167   : > { %v811_v63 = vadd.f32 %v810_v59, %v809_v29  ;;  %v828_v59 = vsel %vm736_vm0, %v647_v54, 0.0  ;;  %v840_v54 = vsel %vm736_vm0, %v677_v25, 0.0 }
 0x169   : > { %v813_v51 = vadd.f32 %v812_v40, %v811_v63  ;;  %v3458_v63 = vpop.f32.mrf.mxu1 }
 0x16a   : > { %v850_v20 = vsel %vm736_vm0, %v3458_v63, 0.0 }
 0x16b   : > { %v815_v19 = vadd.f32 %v814_v58, %v813_v51  ;;  %v832_v51 = vsel %vm736_vm0, %v657_v53, 0.0  ;;  %v697_v24 = vpop.f32.mrf.mxu1  ;;  %v844_v53 = vsel %vm736_vm0, %v687_v33, 0.0 }
 0x16d   : > { %v817_v44 = vadd.f32 %v816_v52, %v815_v19  ;;  %v834_v19 = vsel %vm736_vm0, %v3446_v45, 0.0  ;;  %v836_v52 = vsel %vm736_vm0, %v667_v4, 0.0  ;;  %v846_v45 = vsel %vm736_vm0, %v3455_v62, 0.0 }
 0x16e   : > { %v848_v4 = vsel %vm736_vm0, %v697_v24, 0.0 }
 0x16f   : > { %v819_v60 = vadd.f32 %v818_v50, %v817_v44  ;;  %v3461_v50 = vpop.f32.mrf.mxu1 }
 0x170   : > { %v854_v49 = vsel %vm736_vm0, %v3461_v50, 0.0 }
 0x171   : > { %v821_v55 = vadd.f32 %v820_v48, %v819_v60 }
 0x173   : > { %v823_v47 = vadd.f32 %v822_v41, %v821_v55  ;;  %v707_v55 = vpop.f32.mrf.mxu1 }
 0x174   : > { %v852_v25 = vsel %vm736_vm0, %v707_v55, 0.0 }
 0x175   : > { %v825_v57 = vadd.f32 %v824_v28, %v823_v47  ;;  %v3464_v28 = vpop.f32.mrf.mxu1 }
 0x176   : > { %v858_v62 = vsel %vm736_vm0, %v3464_v28, 0.0 }
 0x177   : > { %v827_v29 = vadd.f32 %v826_v61, %v825_v57 }
 0x179   : > { %v829_v32 = vadd.f32 %v828_v59, %v827_v29  ;;  %v717_v29 = vpop.f32.mrf.mxu1 }
 0x17a   : > { %v856_v33 = vsel %vm736_vm0, %v717_v29, 0.0 }
 0x17b   : > { %v831_v40 = vadd.f32 %v830_v21, %v829_v32  ;;  %v3467_v21 = vpop.f32.mrf.mxu1 }
 0x17c   : > { %v862_v63 = vsel %vm736_vm0, %v3467_v21, 0.0 }
 0x17d   : > { %v833_v58 = vadd.f32 %v832_v51, %v831_v40 }
 0x17f   : > { %v835_v36 = vadd.f32 %v834_v19, %v833_v58  ;;  %v727_v58 = vpop.f32.mrf.mxu1 }
 0x180   : > { %v860_v24 = vsel %vm736_vm0, %v727_v58, 0.0 }
 0x181   : > { %v837_v44 = vadd.f32 %v836_v52, %v835_v36 }
 0x183   : > { %v839_v60 = vadd.f32 %v838_v56, %v837_v44 }
 0x185   : > { %v841_v48 = vadd.f32 %v840_v54, %v839_v60 }
 0x187   : > { %v843_v41 = vadd.f32 %v842_v37, %v841_v48 }
 0x189   : > { %v845_v47 = vadd.f32 %v844_v53, %v843_v41 }
 0x18b   : > { %v847_v57 = vadd.f32 %v846_v45, %v845_v47 }
 0x18d   : > { %v849_v61 = vadd.f32 %v848_v4, %v847_v57 }
 0x18f   : > { %v851_v59 = vadd.f32 %v850_v20, %v849_v61  ;;  %v5962_v61 = vld [vmem:[#allocation10_spill] sm:$0xff]  ;;  %v5964_v20 = vld [vmem:[#allocation13_spill] sm:$0xff] }
 0x191   : > { %v853_v32 = vadd.f32 %v852_v25, %v851_v59  ;;  %v5966_v25 = vld [vmem:[#allocation14_spill] sm:$0xff] }
 0x193   : > { %v855_v40 = vadd.f32 %v854_v49, %v853_v32  ;;  %v5968_v49 = vld [vmem:[#allocation17_spill] sm:$0xff] }
 0x195   : > { %v857_v51 = vadd.f32 %v856_v33, %v855_v40 }
 0x197   : > { %v859_v19 = vadd.f32 %v858_v62, %v857_v51  ;;  %v5970_v51 = vld [vmem:[#allocation18_spill] sm:$0xff] }
 0x199   : > { %v861_v36 = vadd.f32 %v860_v24, %v859_v19  ;;  %v5972_v19 = vld [vmem:[#allocation21_spill] sm:$0xff] }
 0x19b   : > { %v863_v52 = vadd.f32 %v862_v63, %v861_v36  ;;  %v5974_v63 = vld [vmem:[#allocation22_spill] sm:$0xff] }
 0x19d   : > { %v864_v44 = vrot.slane %v863_v52, 4 }
 0x19f   : > { %v865_v56 = vadd.f32 %v864_v44, %v863_v52 }
 0x1a1   : > { %v866_v60 = vrot.slane %v865_v56, 2 }
 0x1a3   : > { %v867_v54 = vadd.f32 %v866_v60, %v865_v56  ;;  %v5976_v56 = vld [vmem:[#allocation25_spill] sm:$0xff] }
 0x1a5   : > { %v868_v48 = vrot.slane %v867_v54, 1 }
 0x1a7   : > { %v869_v50 = vadd.f32 %v868_v48, %v867_v54  ;;  %v5978_v48 = vld [vmem:[#allocation26_spill] sm:$0xff] }
 0x1a9   : > { %v870_v55 = vmul.f32 0.00048828125, %v869_v50 }
 0x1ab   : > { %3501 = vmatmul.mubr.msk.f32.vlgmr.msra.gmra.mxu1 %vm736_vm0, %v870_v55 }
 0x1ac   : > { %3504 = vmatpush3.msra.mxu1 %v4101_v0  ;;  %v992_v0 = vlaneseq }
 0x1ad   : > { %3505 = vmatprep.subr.mxu1 %v4106_v1 }
 0x1ae   : > { %3506 = vmatpush3.msra.mxu1 %v4106_v1 }
 0x1af   : > { %3507 = vmatprep.subr.mxu1 %v4114_v2 }
 0x1b0   : > { %3508 = vmatpush3.msra.mxu1 %v4114_v2 }
 0x1b1   : > { %3509 = vmatprep.subr.mxu1 %v4123_v3 }
 0x1b2   : > { %3510 = vmatpush3.msra.mxu1 %v4123_v3  ;;  %v4687_v3 = vshrl.u32 %v992_v0, 7  ;;  %v5980_v0 = vld [vmem:[#allocation29_spill] sm:$0xff] }
 0x1b3   : > { %3511 = vmatprep.subr.mxu1 %v4133_v5 }
 0x1b4   : > { %3512 = vmatpush3.msra.mxu1 %v4133_v5  ;;  %v5893_v5 = vsub.s32 0, %v4687_v3 }
 0x1b5   : > { %3513 = vmatprep.subr.mxu1 %v4141_v6 }
 0x1b6   : > { %3514 = vmatpush3.msra.mxu1 %v4141_v6 }
 0x1b7   : > { %3515 = vmatprep.subr.mxu1 %v4150_v7 }
 0x1b8   : > { %3516 = vmatpush3.msra.mxu1 %v4150_v7  ;;  %v3840_v7 = vld [vmem:[%s4092_s13] sm:$0xff] }
 0x1b9   : > { %3517 = vmatprep.subr.mxu1 %v4159_v8 }
 0x1ba   : > { %3518 = vmatpush3.msra.mxu1 %v4159_v8 }
 0x1bb   : > { %3519 = vmatprep.subr.mxu1 %v4168_v9 }
 0x1bc   : > { %3520 = vmatpush3.msra.mxu1 %v4168_v9 }
 0x1bd   : > { %3521 = vmatprep.subr.mxu1 %v4177_v10 }
 0x1be   : > { %3522 = vmatpush3.msra.mxu1 %v4177_v10 }
 0x1bf   : > { %3523 = vmatprep.subr.mxu1 %v4186_v11 }
 0x1c0   : > { %3524 = vmatpush3.msra.mxu1 %v4186_v11 }
 0x1c1   : > { %3525 = vmatprep.subr.mxu1 %v4195_v12 }
 0x1c2   : > { %3526 = vmatpush3.msra.mxu1 %v4195_v12 }
 0x1c3   : > { %3527 = vmatprep.subr.mxu1 %v4204_v13 }
 0x1c4   : > { %3528 = vmatpush3.msra.mxu1 %v4204_v13 }
 0x1c5   : > { %3529 = vmatprep.subr.mxu1 %v4213_v14 }
 0x1c6   : > { %3530 = vmatpush3.msra.mxu1 %v4213_v14 }
 0x1c7   : > { %3531 = vmatprep.subr.mxu1 %v4222_v15 }
 0x1c8   : > { %3532 = vmatpush3.msra.mxu1 %v4222_v15 }
 0x1c9   : > { %3533 = vmatprep.subr.mxu1 %v4229_v16 }
 0x1ca   : > { %3534 = vmatpush3.msra.mxu1 %v4229_v16 }
 0x26b   : > { %v988_v1 = vpop.f32.mrf.mxu1 }
 0x26c   : > { %v4692_v6 = vrot.slane %v988_v1, %v5893_v5  ;;  %v6006_v5 = vld [vmem:[#allocation27_spill] sm:$0xff] }
 0x26d   : > { %v3502_v2 = vpop.f32.mrf.mxu1 }
 0x26e   : > { %v4696_v8 = vsub.f32 %v3840_v7, %v4692_v6  ;;  %v4700_v9 = vsub.f32 %v4234_v17, %v4692_v6  ;;  %v4704_v10 = vsub.f32 %v4239_v18, %v4692_v6  ;;  %v4712_v13 = vsub.f32 %v4255_v22, %v4692_v6  ;;  %v5982_v7 = vld [vmem:[#allocation30_spill] sm:$0xff] }
 0x26f   : > { %v4716_v14 = vsub.f32 %v4258_v23, %v4692_v6  ;;  %v4722_v16 = vsub.f32 %v4265_v26, %v4692_v6  ;;  %v4728_v18 = vsub.f32 %v4268_v27, %v4692_v6  ;;  %v4734_v23 = vsub.f32 %v4275_v30, %v4692_v6 }
 0x270   : > { %v1060_v11 = vmul.f32 %v4696_v8, %v4696_v8  ;;  %v1061_v12 = vmul.f32 %v4700_v9, %v4700_v9  ;;  %v1062_v15 = vmul.f32 %v4704_v10, %v4704_v10  ;;  %v1063_v17 = vmul.f32 %v4712_v13, %v4712_v13 }
 0x271   : > { %v1064_v22 = vmul.f32 %v4716_v14, %v4716_v14  ;;  %v1065_v26 = vmul.f32 %v4722_v16, %v4722_v16  ;;  %v4740_v37 = vsub.f32 %v4278_v31, %v4692_v6  ;;  %v1066_v27 = vmul.f32 %v4728_v18, %v4728_v18 }
 0x272   : > { %3535 = vmatprep.mubr.f32.mxu1 %v1060_v11  ;;  %v4746_v41 = vsub.f32 %v4285_v34, %v4692_v6  ;;  %v1067_v30 = vmul.f32 %v4734_v23, %v4734_v23  ;;  %v4752_v53 = vsub.f32 %v4288_v35, %v4692_v6  ;;  %v4758_v47 = vsub.f32 %v4295_v38, %v4692_v6 }
 0x273   : > { %3536 = vmatmul.mubr.f32.vlgmr.msra.gmra.mxu1 %v1061_v12  ;;  %v1068_v31 = vmul.f32 %v4740_v37, %v4740_v37  ;;  %v4764_v28 = vsub.f32 %v4298_v39, %v4692_v6  ;;  %v4770_v45 = vsub.f32 %v4305_v42, %v4692_v6  ;;  %v4776_v57 = vsub.f32 %v4308_v43, %v4692_v6 }
 0x274   : > { %3538 = vmatprep.mubr.f32.mxu1 %v1062_v15  ;;  %v1069_v34 = vmul.f32 %v4746_v41, %v4746_v41  ;;  %v1070_v35 = vmul.f32 %v4752_v53, %v4752_v53  ;;  %v1071_v38 = vmul.f32 %v4758_v47, %v4758_v47  ;;  %v4782_v4 = vsub.f32 %v4319_v46, %v4692_v6  ;;  %v5984_v15 = vld [vmem:[#allocation33_spill] sm:$0xff] }
 0x275   : > { %5958 = vst [vmem:[#allocation43_spill] sm:$0xff] %v4764_v28  ;;  %5959 = vst [vmem:[#allocation44_spill] sm:$0xff] %v4770_v45  ;;  %v1072_v39 = vmul.f32 %v4764_v28, %v4764_v28  ;;  %v1073_v42 = vmul.f32 %v4770_v45, %v4770_v45  ;;  %v4788_v29 = vsub.f32 %v5962_v61, %v4692_v6  ;;  %v5992_v61 = vld [vmem:[#allocation41_spill] sm:$0xff] }
 0x276   : > { %5960 = vst [vmem:[#allocation45_spill] sm:$0xff] %v4776_v57  ;;  %5961 = vst [vmem:[#allocation46_spill] sm:$0xff] %v4782_v4  ;;  %v1074_v43 = vmul.f32 %v4776_v57, %v4776_v57  ;;  %v4794_v59 = vsub.f32 %v5964_v20, %v4692_v6  ;;  %v1075_v46 = vmul.f32 %v4782_v4, %v4782_v4 }
 0x277   : > { %3539 = vmatmul.mubr.f32.gmra.mxu1 %v1063_v17  ;;  %5963 = vst [vmem:[#allocation10_spill] sm:$0xff] %v4788_v29  ;;  %v4800_v32 = vsub.f32 %v5966_v25, %v4692_v6  ;;  %v1076_v21 = vmul.f32 %v4788_v29, %v4788_v29  ;;  %v4806_v40 = vsub.f32 %v5968_v49, %v4692_v6  ;;  %v3842_v49 = vld [vmem:[%s4092_s13 + $0x108] sm:$0xff] }
 0x278   : > { %3541 = vmatprep.mubr.f32.mxu1 %v1064_v22  ;;  %5965 = vst [vmem:[#allocation13_spill] sm:$0xff] %v4794_v59  ;;  %v1077_v33 = vmul.f32 %v4794_v59, %v4794_v59  ;;  %v4812_v58 = vsub.f32 %v5970_v51, %v4692_v6  ;;  %v4818_v24 = vsub.f32 %v5972_v19, %v4692_v6 }
 0x279   : > { %5967 = vst [vmem:[#allocation14_spill] sm:$0xff] %v4800_v32  ;;  %5969 = vst [vmem:[#allocation17_spill] sm:$0xff] %v4806_v40  ;;  %v1078_v62 = vmul.f32 %v4800_v32, %v4800_v32  ;;  %v1079_v36 = vmul.f32 %v4806_v40, %v4806_v40  ;;  %v4824_v52 = vsub.f32 %v5974_v63, %v4692_v6  ;;  %v3844_v63 = vld [vmem:[%s4092_s13 + $0x118] sm:$0xff] }
 0x27a   : > { %5971 = vst [vmem:[#allocation18_spill] sm:$0xff] %v4812_v58  ;;  %5973 = vst [vmem:[#allocation21_spill] sm:$0xff] %v4818_v24  ;;  %v1080_v44 = vmul.f32 %v4812_v58, %v4812_v58  ;;  %v4830_v60 = vsub.f32 %v5976_v56, %v4692_v6  ;;  %v1081_v54 = vmul.f32 %v4818_v24, %v4818_v24 }
 0x27b   : > { %3542 = vmatmul.mubr.f32.gmra.mxu1 %v1065_v26  ;;  %5975 = vst [vmem:[#allocation22_spill] sm:$0xff] %v4824_v52  ;;  %v4836_v50 = vsub.f32 %v5978_v48, %v4692_v6  ;;  %v1082_v55 = vmul.f32 %v4824_v52, %v4824_v52  ;;  %v4842_v1 = vsub.f32 %v5980_v0, %v4692_v6  ;;  %v5986_v26 = vld [vmem:[#allocation34_spill] sm:$0xff]  ;;  %v3846_v0 = vld [vmem:[%s4092_s13 + $0x128] sm:$0xff] }
 0x27c   : > { %3544 = vmatprep.mubr.f32.mxu1 %v1066_v27  ;;  %5977 = vst [vmem:[#allocation25_spill] sm:$0xff] %v4830_v60  ;;  %v1083_v2 = vmul.f32 %v4830_v60, %v4830_v60  ;;  %v4848_v11 = vsub.f32 %v5982_v7, %v4692_v6  ;;  %v4854_v17 = vsub.f32 %v5984_v15, %v4692_v6 }
 0x27d   : > { %5979 = vst [vmem:[#allocation26_spill] sm:$0xff] %v4836_v50  ;;  %5981 = vst [vmem:[#allocation29_spill] sm:$0xff] %v4842_v1  ;;  %v1084_v12 = vmul.f32 %v4836_v50, %v4836_v50  ;;  %v1085_v22 = vmul.f32 %v4842_v1, %v4842_v1  ;;  %v4860_v27 = vsub.f32 %v5986_v26, %v4692_v6  ;;  %v3848_v26 = vld [vmem:[%s4092_s13 + $0x138] sm:$0xff] }
 0x27e   : > { %5983 = vst [vmem:[#allocation30_spill] sm:$0xff] %v4848_v11  ;;  %5985 = vst [vmem:[#allocation33_spill] sm:$0xff] %v4854_v17 }
 0x27f   : > { %3545 = vmatmul.mubr.f32.gmra.mxu1 %v1067_v30  ;;  %5987 = vst [vmem:[#allocation34_spill] sm:$0xff] %v4860_v27  ;;  %v1086_v30 = vmul.f32 %v4848_v11, %v4848_v11  ;;  %v6014_v11 = vld [vmem:[#allocation42_spill] sm:$0xff] }
 0x280   : > { %3547 = vmatprep.mubr.f32.mxu1 %v1068_v31  ;;  %v5988_v31 = vld [vmem:[#allocation37_spill] sm:$0xff] }
 0x283   : > { %3548 = vmatmul.mubr.f32.gmra.mxu1 %v1069_v34  ;;  %v4866_v34 = vsub.f32 %v5988_v31, %v4692_v6 }
 0x284   : > { %3550 = vmatprep.mubr.f32.mxu1 %v1070_v35  ;;  %v1087_v35 = vmul.f32 %v4854_v17, %v4854_v17 }
 0x285   : > { %5989 = vst [vmem:[#allocation37_spill] sm:$0xff] %v4866_v34  ;;  %v1089_v20 = vmul.f32 %v4866_v34, %v4866_v34 }
 0x287   : > { %3551 = vmatmul.mubr.f32.gmra.mxu1 %v1071_v38  ;;  %v5990_v38 = vld [vmem:[#allocation38_spill] sm:$0xff] }
 0x288   : > { %3553 = vmatprep.mubr.f32.mxu1 %v1072_v39  ;;  %v4872_v39 = vsub.f32 %v5990_v38, %v4692_v6 }
 0x28a   : > { %5991 = vst [vmem:[#allocation38_spill] sm:$0xff] %v4872_v39 }
 0x28b   : > { %3554 = vmatmul.mubr.f32.gmra.mxu1 %v1073_v42  ;;  %v1088_v42 = vmul.f32 %v4860_v27, %v4860_v27  ;;  %v6012_v27 = vld [vmem:[#allocation39_spill] sm:$0xff] }
 0x28c   : > { %3556 = vmatprep.mubr.f32.mxu1 %v1074_v43  ;;  %v4878_v43 = vsub.f32 %v5992_v61, %v4692_v6  ;;  %v3850_v61 = vld [vmem:[%s4092_s13 + $0x148] sm:$0xff] }
 0x28e   : > { %5993 = vst [vmem:[#allocation41_spill] sm:$0xff] %v4878_v43  ;;  %v1091_v51 = vmul.f32 %v4878_v43, %v4878_v43 }
 0x28f   : > { %3557 = vmatmul.mubr.f32.gmra.mxu1 %v1075_v46  ;;  %v3841_v46 = vld [vmem:[%s4092_s13 + $0x100] sm:$0xff] }
 0x290   : > { %3559 = vmatprep.mubr.f32.mxu1 %v1076_v21  ;;  %v4884_v25 = vsub.f32 %v3841_v46, %v4692_v6  ;;  %v1090_v21 = vmul.f32 %v4872_v39, %v4872_v39  ;;  %v6010_v39 = vld [vmem:[#allocation35_spill] sm:$0xff] }
 0x292   : > { %5994 = vst [vmem:[#allocation47_spill] sm:$0xff] %v4884_v25 }
 0x293   : > { %3560 = vmatmul.mubr.f32.gmra.mxu1 %v1077_v33  ;;  %v4890_v33 = vsub.f32 %v3842_v49, %v4692_v6 }
 0x294   : > { %3562 = vmatprep.mubr.f32.mxu1 %v1078_v62  ;;  %v3843_v62 = vld [vmem:[%s4092_s13 + $0x110] sm:$0xff] }
 0x295   : > { %5995 = vst [vmem:[#allocation48_spill] sm:$0xff] %v4890_v33  ;;  %v4896_v19 = vsub.f32 %v3843_v62, %v4692_v6  ;;  %v1093_v56 = vmul.f32 %v4890_v33, %v4890_v33  ;;  %v3852_v62 = vld [vmem:[%s4092_s13 + $0x158] sm:$0xff] }
 0x297   : > { %3563 = vmatmul.mubr.f32.gmra.mxu1 %v1079_v36  ;;  %v1092_v36 = vmul.f32 %v4884_v25, %v4884_v25  ;;  %v6008_v25 = vld [vmem:[#allocation31_spill] sm:$0xff] }
 0x298   : > { %3565 = vmatprep.mubr.f32.mxu1 %v1080_v44  ;;  %v4902_v44 = vsub.f32 %v3844_v63, %v4692_v6 }
 0x29a   : > { %v1095_v7 = vmul.f32 %v4902_v44, %v4902_v44 }
 0x29b   : > { %3566 = vmatmul.mubr.f32.gmra.mxu1 %v1081_v54  ;;  %v3845_v54 = vld [vmem:[%s4092_s13 + $0x120] sm:$0xff] }
 0x29c   : > { %3568 = vmatprep.mubr.f32.mxu1 %v1082_v55  ;;  %v4908_v48 = vsub.f32 %v3845_v54, %v4692_v6  ;;  %v1094_v55 = vmul.f32 %v4896_v19, %v4896_v19 }
 0x29f   : > { %3569 = vmatmul.mubr.f32.gmra.mxu1 %v1083_v2  ;;  %v4914_v2 = vsub.f32 %v3846_v0, %v4692_v6  ;;  %v5996_v0 = vld [vmem:[#allocation8_spill] sm:$0xff] }
 0x2a0   : > { %3571 = vmatprep.mubr.f32.mxu1 %v1084_v12  ;;  %v3847_v12 = vld [vmem:[%s4092_s13 + $0x130] sm:$0xff] }
 0x2a1   : > { %v4920_v15 = vsub.f32 %v3847_v12, %v4692_v6  ;;  %v1097_v31 = vmul.f32 %v4914_v2, %v4914_v2 }
 0x2a3   : > { %3572 = vmatmul.mubr.f32.gmra.mxu1 %v1085_v22  ;;  %v1096_v22 = vmul.f32 %v4908_v48, %v4908_v48 }
 0x2a4   : > { %3574 = vmatprep.mubr.f32.mxu1 %v1086_v30  ;;  %v4926_v30 = vsub.f32 %v3848_v26, %v4692_v6 }
 0x2a6   : > { %v1099_v46 = vmul.f32 %v4926_v30, %v4926_v30 }
 0x2a7   : > { %3575 = vmatmul.mubr.f32.gmra.mxu1 %v1087_v35  ;;  %v3849_v35 = vld [vmem:[%s4092_s13 + $0x140] sm:$0xff] }
 0x2a8   : > { %3577 = vmatprep.mubr.f32.mxu1 %v1088_v42  ;;  %v4932_v38 = vsub.f32 %v3849_v35, %v4692_v6  ;;  %v1098_v42 = vmul.f32 %v4920_v15, %v4920_v15  ;;  %v5998_v35 = vld [vmem:[#allocation11_spill] sm:$0xff] }
 0x2ab   : > { %3578 = vmatmul.mubr.f32.gmra.mxu1 %v1089_v20  ;;  %v4938_v20 = vsub.f32 %v3850_v61, %v4692_v6 }
 0x2ac   : > { %3580 = vmatprep.mubr.f32.mxu1 %v1090_v21  ;;  %v3851_v21 = vld [vmem:[%s4092_s13 + $0x150] sm:$0xff] }
 0x2ad   : > { %v4944_v49 = vsub.f32 %v3851_v21, %v4692_v6  ;;  %v1101_v63 = vmul.f32 %v4938_v20, %v4938_v20 }
 0x2af   : > { %3581 = vmatmul.mubr.f32.gmra.mxu1 %v1091_v51  ;;  %v1100_v51 = vmul.f32 %v4932_v38, %v4932_v38 }
 0x2b0   : > { %3583 = vmatprep.mubr.f32.mxu1 %v1092_v36  ;;  %v4950_v36 = vsub.f32 %v3852_v62, %v4692_v6  ;;  %v6000_v62 = vld [vmem:[#allocation15_spill] sm:$0xff] }
 0x2b2   : > { %v1103_v12 = vmul.f32 %v4950_v36, %v4950_v36 }
 0x2b3   : > { %3584 = vmatmul.mubr.f32.gmra.mxu1 %v1093_v56  ;;  %v3853_v56 = vld [vmem:[%s4092_s13 + $0x160] sm:$0xff]  ;;  %s5800_s13 = scalar_lea.hbm %s5853_s6, %s2914_s19 }
 0x2b4   : > { %3586 = vmatprep.mubr.f32.mxu1 %v1094_v55  ;;  %v4956_v54 = vsub.f32 %v3853_v56, %v4692_v6  ;;  %v1102_v55 = vmul.f32 %v4944_v49, %v4944_v49 }
 0x2b7   : > { %3587 = vmatmul.mubr.f32.gmra.mxu1 %v1095_v7  ;;  %v4962_v7 = vsub.f32 %v5996_v0, %v4692_v6 }
 0x2b8   : > { %3589 = vmatprep.mubr.f32.mxu1 %v1096_v22  ;;  %v5997_v22 = vld [vmem:[#allocation9_spill] sm:$0xff] }
 0x2b9   : > { %v4968_v26 = vsub.f32 %v5997_v22, %v4692_v6  ;;  %v1105_v61 = vmul.f32 %v4962_v7, %v4962_v7  ;;  %v6002_v22 = vld [vmem:[#allocation19_spill] sm:$0xff] }
 0x2bb   : > { %3590 = vmatmul.mubr.f32.gmra.mxu1 %v1097_v31  ;;  %v1104_v31 = vmul.f32 %v4956_v54, %v4956_v54 }
 0x2bc   : > { %3592 = vmatprep.mubr.f32.mxu1 %v1098_v42  ;;  %v4974_v42 = vsub.f32 %v5998_v35, %v4692_v6 }
 0x2be   : > { %v1107_v56 = vmul.f32 %v4974_v42, %v4974_v42 }
 0x2bf   : > { %3593 = vmatmul.mubr.f32.gmra.mxu1 %v1099_v46  ;;  %v5999_v46 = vld [vmem:[#allocation12_spill] sm:$0xff] }
 0x2c0   : > { %3595 = vmatprep.mubr.f32.mxu1 %v1100_v51  ;;  %v4980_v21 = vsub.f32 %v5999_v46, %v4692_v6  ;;  %v1106_v51 = vmul.f32 %v4968_v26, %v4968_v26 }
 0x2c3   : > { %3596 = vmatmul.mubr.f32.gmra.mxu1 %v1101_v63  ;;  %v4986_v63 = vsub.f32 %v6000_v62, %v4692_v6  ;;  %v6004_v62 = vld [vmem:[#allocation23_spill] sm:$0xff] }
 0x2c4   : > { %3598 = vmatprep.mubr.f32.mxu1 %v1102_v55  ;;  %v6001_v55 = vld [vmem:[#allocation16_spill] sm:$0xff] }
 0x2c5   : > { %v4992_v0 = vsub.f32 %v6001_v55, %v4692_v6  ;;  %v1109_v35 = vmul.f32 %v4986_v63, %v4986_v63 }
 0x2c7   : > { %3599 = vmatmul.mubr.f32.gmra.mxu1 %v1103_v12  ;;  %v1108_v12 = vmul.f32 %v4980_v21, %v4980_v21 }
 0x2c8   : > { %3601 = vmatprep.mubr.f32.mxu1 %v1104_v31  ;;  %v4998_v31 = vsub.f32 %v6002_v22, %v4692_v6 }
 0x2ca   : > { %v1111_v55 = vmul.f32 %v4998_v31, %v4998_v31 }
 0x2cb   : > { %3602 = vmatmul.mubr.f32.gmra.mxu1 %v1105_v61  ;;  %v6003_v61 = vld [vmem:[#allocation20_spill] sm:$0xff] }
 0x2cc   : > { %3604 = vmatprep.mubr.f32.mxu1 %v1106_v51  ;;  %v5004_v46 = vsub.f32 %v6003_v61, %v4692_v6  ;;  %v1110_v51 = vmul.f32 %v4992_v0, %v4992_v0 }
 0x2ce   : > { %v1112_v61 = vmul.f32 %v5004_v46, %v5004_v46 }
 0x2cf   : > { %3605 = vmatmul.mubr.f32.gmra.mxu1 %v1107_v56  ;;  %v5010_v56 = vsub.f32 %v6004_v62, %v4692_v6  ;;  %v6007_v62 = vld [vmem:[#allocation28_spill] sm:$0xff] }
 0x2d0   : > { %3607 = vmatprep.mubr.f32.mxu1 %v1108_v12  ;;  %v6005_v12 = vld [vmem:[#allocation24_spill] sm:$0xff]  ;;  %v5028_v33 = vsub.f32 %v6007_v62, %v4692_v6 }
 0x2d1   : > { %v5016_v22 = vsub.f32 %v6005_v12, %v4692_v6 }
 0x2d2   : > { %v1116_v62 = vmul.f32 %v5028_v33, %v5028_v33 }
 0x2d3   : > { %3608 = vmatmul.mubr.f32.gmra.mxu1 %v1109_v35  ;;  %v5022_v35 = vsub.f32 %v6006_v5, %v4692_v6  ;;  %v1114_v12 = vmul.f32 %v5016_v22, %v5016_v22 }
 0x2d4   : > { %3610 = vmatprep.mubr.f32.mxu1 %v1110_v51  ;;  %v1113_v51 = vmul.f32 %v5010_v56, %v5010_v56 }
 0x2d5   : > { %v1115_v5 = vmul.f32 %v5022_v35, %v5022_v35 }
 0x2d7   : > { %3611 = vmatmul.mubr.f32.gmra.mxu1 %v1111_v55  ;;  %v5034_v55 = vsub.f32 %v6008_v25, %v4692_v6 }
 0x2d8   : > { %3613 = vmatprep.mubr.f32.mxu1 %v1112_v61  ;;  %v6009_v61 = vld [vmem:[#allocation32_spill] sm:$0xff] }
 0x2d9   : > { %v5040_v43 = vsub.f32 %v6009_v61, %v4692_v6  ;;  %v1117_v25 = vmul.f32 %v5034_v55, %v5034_v55 }
 0x2db   : > { %3614 = vmatmul.mubr.f32.gmra.mxu1 %v1113_v51  ;;  %v5046_v51 = vsub.f32 %v6010_v39, %v4692_v6  ;;  %v1118_v61 = vmul.f32 %v5040_v43, %v5040_v43 }
 0x2dc   : > { %3616 = vmatprep.mubr.f32.mxu1 %v1114_v12  ;;  %v6011_v12 = vld [vmem:[#allocation36_spill] sm:$0xff] }
 0x2dd   : > { %v5052_v34 = vsub.f32 %v6011_v12, %v4692_v6  ;;  %v1119_v39 = vmul.f32 %v5046_v51, %v5046_v51 }
 0x2df   : > { %3617 = vmatmul.mubr.f32.gmra.mxu1 %v1115_v5  ;;  %v5058_v5 = vsub.f32 %v6012_v27, %v4692_v6  ;;  %v1120_v12 = vmul.f32 %v5052_v34, %v5052_v34 }
 0x2e0   : > { %3619 = vmatprep.mubr.f32.mxu1 %v1116_v62  ;;  %v6013_v62 = vld [vmem:[#allocation40_spill] sm:$0xff] }
 0x2e1   : > { %v5064_v17 = vsub.f32 %v6013_v62, %v4692_v6  ;;  %v1121_v27 = vmul.f32 %v5058_v5, %v5058_v5 }
 0x2e3   : > { %3620 = vmatmul.mubr.f32.gmra.mxu1 %v1117_v25  ;;  %v5070_v25 = vsub.f32 %v6014_v11, %v4692_v6 }
 0x2e4   : > { %3622 = vmatprep.mubr.f32.mxu1 %v1118_v61  ;;  %v1122_v61 = vmul.f32 %v5064_v17, %v5064_v17 }
 0x2e5   : > { %v1123_v62 = vmul.f32 %v5070_v25, %v5070_v25 }
 0x2e7   : > { %3623 = vmatmul.mubr.f32.gmra.mxu1 %v1119_v39 }
 0x2e8   : > { %3625 = vmatprep.mubr.f32.mxu1 %v1120_v12 }
 0x2eb   : > { %3626 = vmatmul.mubr.f32.gmra.mxu1 %v1121_v27 }
 0x2ec   : > { %3628 = vmatprep.mubr.f32.mxu1 %v1122_v61 }
 0x2ef   : > { %3629 = vmatmul.mubr.f32.gmra.mxu1 %v1123_v62 }
 0x333   : > { %v3537_v1 = vpop.f32.mrf.mxu1 }
 0x334   : > { %v1510_v6 = vsel %vm736_vm0, %v3537_v1, 0.0 }
 0x335   : > { %v1190_v50 = vpop.f32.mrf.mxu1 }
 0x336   : > { %v1509_v39 = vsel %vm736_vm0, %v1190_v50, 0.0 }
 0x337   : > { %v3540_v12 = vpop.f32.mrf.mxu1  ;;  %v1511_v11 = vadd.f32 %v1510_v6, %v1509_v39 }
 0x338   : > { %v1514_v27 = vsel %vm736_vm0, %v3540_v12, 0.0 }
 0x339   : > { %v1200_v60 = vpop.f32.mrf.mxu1 }
 0x33a   : > { %v1512_v52 = vsel %vm736_vm0, %v1200_v60, 0.0 }
 0x33b   : > { %v1513_v24 = vadd.f32 %v1512_v52, %v1511_v11  ;;  %v3543_v58 = vpop.f32.mrf.mxu1 }
 0x33c   : > { %v1518_v29 = vsel %vm736_vm0, %v3543_v58, 0.0 }
 0x33d   : > { %v1515_v61 = vadd.f32 %v1514_v27, %v1513_v24  ;;  %v1210_v40 = vpop.f32.mrf.mxu1  ;;  %v5089_v24 = vld [vmem:[%s5851_s4 + $0x38] sm:$0xff]  }
 0x33e   : > { %v1516_v32 = vsel %vm736_vm0, %v1210_v40, 0.0  ;;  %3666 = vmatprep.subr.bf16.mxu0 %v5089_v24 }
 0x33f   : > { %v1517_v62 = vadd.f32 %v1516_v32, %v1515_v61  ;;  %v3546_v59 = vpop.f32.mrf.mxu1 }
 0x340   : > { %v1522_v60 = vsel %vm736_vm0, %v3546_v59, 0.0 }
 0x341   : > { %v1220_v50 = vpop.f32.mrf.mxu1  ;;  %v1519_v4 = vadd.f32 %v1518_v29, %v1517_v62 }
 0x342   : > { %v1520_v1 = vsel %vm736_vm0, %v1220_v50, 0.0 }
 0x343   : > { %v1521_v39 = vadd.f32 %v1520_v1, %v1519_v4  ;;  %v3549_v6 = vpop.f32.mrf.mxu1 }
 0x344   : > { %v1526_v29 = vsel %vm736_vm0, %v3549_v6, 0.0 }
 0x345   : > { %v1230_v52 = vpop.f32.mrf.mxu1  ;;  %v1523_v11 = vadd.f32 %v1522_v60, %v1521_v39 }
 0x346   : > { %v1524_v32 = vsel %vm736_vm0, %v1230_v52, 0.0 }
 0x347   : > { %v1525_v40 = vadd.f32 %v1524_v32, %v1523_v11  ;;  %v3552_v12 = vpop.f32.mrf.mxu1 }
 0x348   : > { %v1530_v62 = vsel %vm736_vm0, %v3552_v12, 0.0 }
 0x349   : > { %v1240_v58 = vpop.f32.mrf.mxu1  ;;  %v1527_v4 = vadd.f32 %v1526_v29, %v1525_v40 }
 0x34a   : > { %v1528_v27 = vsel %vm736_vm0, %v1240_v58, 0.0 }
 0x34b   : > { %v1529_v59 = vadd.f32 %v1528_v27, %v1527_v4  ;;  %v3555_v61 = vpop.f32.mrf.mxu1 }
 0x34c   : > { %v1534_v11 = vsel %vm736_vm0, %v3555_v61, 0.0 }
 0x34d   : > { %v1250_v50 = vpop.f32.mrf.mxu1  ;;  %v1531_v1 = vadd.f32 %v1530_v62, %v1529_v59 }
 0x34e   : > { %v1532_v39 = vsel %vm736_vm0, %v1250_v50, 0.0 }
 0x34f   : > { %v1533_v60 = vadd.f32 %v1532_v39, %v1531_v1  ;;  %v3558_v52 = vpop.f32.mrf.mxu1 }
 0x350   : > { %v1538_v29 = vsel %vm736_vm0, %v3558_v52, 0.0 }
 0x351   : > { %v1260_v32 = vpop.f32.mrf.mxu1  ;;  %v1535_v57 = vadd.f32 %v1534_v11, %v1533_v60 }
 0x352   : > { %v1536_v6 = vsel %vm736_vm0, %v1260_v32, 0.0 }
 0x353   : > { %v1537_v45 = vadd.f32 %v1536_v6, %v1535_v57  ;;  %v3561_v40 = vpop.f32.mrf.mxu1 }
 0x354   : > { %v1542_v62 = vsel %vm736_vm0, %v3561_v40, 0.0 }
 0x355   : > { %v1270_v58 = vpop.f32.mrf.mxu1  ;;  %v1539_v4 = vadd.f32 %v1538_v29, %v1537_v45 }
 0x356   : > { %v1540_v12 = vsel %vm736_vm0, %v1270_v58, 0.0 }
 0x357   : > { %v1541_v27 = vadd.f32 %v1540_v12, %v1539_v4  ;;  %v3564_v59 = vpop.f32.mrf.mxu1 }
 0x358   : > { %v1546_v11 = vsel %vm736_vm0, %v3564_v59, 0.0 }
 0x359   : > { %v1280_v50 = vpop.f32.mrf.mxu1  ;;  %v1543_v1 = vadd.f32 %v1542_v62, %v1541_v27 }
 0x35a   : > { %v1544_v61 = vsel %vm736_vm0, %v1280_v50, 0.0 }
 0x35b   : > { %v1545_v39 = vadd.f32 %v1544_v61, %v1543_v1  ;;  %v3567_v60 = vpop.f32.mrf.mxu1 }
 0x35c   : > { %v1550_v29 = vsel %vm736_vm0, %v3567_v60, 0.0 }
 0x35d   : > { %v1290_v57 = vpop.f32.mrf.mxu1  ;;  %v1547_v32 = vadd.f32 %v1546_v11, %v1545_v39 }
 0x35e   : > { %v1548_v52 = vsel %vm736_vm0, %v1290_v57, 0.0 }
 0x35f   : > { %v1549_v6 = vadd.f32 %v1548_v52, %v1547_v32  ;;  %v3570_v45 = vpop.f32.mrf.mxu1 }
 0x360   : > { %v1554_v62 = vsel %vm736_vm0, %v3570_v45, 0.0 }
 0x361   : > { %v1300_v58 = vpop.f32.mrf.mxu1  ;;  %v1551_v4 = vadd.f32 %v1550_v29, %v1549_v6 }
 0x362   : > { %v1552_v40 = vsel %vm736_vm0, %v1300_v58, 0.0 }
 0x363   : > { %v1553_v12 = vadd.f32 %v1552_v40, %v1551_v4  ;;  %v3573_v27 = vpop.f32.mrf.mxu1 }
 0x364   : > { %v1558_v11 = vsel %vm736_vm0, %v3573_v27, 0.0 }
 0x365   : > { %v1310_v50 = vpop.f32.mrf.mxu1  ;;  %v1555_v1 = vadd.f32 %v1554_v62, %v1553_v12 }
 0x366   : > { %v1556_v59 = vsel %vm736_vm0, %v1310_v50, 0.0 }
 0x367   : > { %v1557_v61 = vadd.f32 %v1556_v59, %v1555_v1  ;;  %v3576_v39 = vpop.f32.mrf.mxu1 }
 0x368   : > { %v1562_v29 = vsel %vm736_vm0, %v3576_v39, 0.0 }
 0x369   : > { %v1320_v57 = vpop.f32.mrf.mxu1  ;;  %v1559_v32 = vadd.f32 %v1558_v11, %v1557_v61 }
 0x36a   : > { %v1560_v60 = vsel %vm736_vm0, %v1320_v57, 0.0 }
 0x36b   : > { %v1561_v52 = vadd.f32 %v1560_v60, %v1559_v32  ;;  %v3579_v6 = vpop.f32.mrf.mxu1 }
 0x36c   : > { %v1566_v62 = vsel %vm736_vm0, %v3579_v6, 0.0 }
 0x36d   : > { %v1330_v58 = vpop.f32.mrf.mxu1  ;;  %v1563_v4 = vadd.f32 %v1562_v29, %v1561_v52 }
 0x36e   : > { %v1564_v45 = vsel %vm736_vm0, %v1330_v58, 0.0 }
 0x36f   : > { %v1565_v40 = vadd.f32 %v1564_v45, %v1563_v4  ;;  %v3582_v12 = vpop.f32.mrf.mxu1 }
 0x370   : > { %v1570_v11 = vsel %vm736_vm0, %v3582_v12, 0.0 }
 0x371   : > { %v1340_v50 = vpop.f32.mrf.mxu1  ;;  %v1567_v1 = vadd.f32 %v1566_v62, %v1565_v40 }
 0x372   : > { %v1568_v27 = vsel %vm736_vm0, %v1340_v50, 0.0 }
 0x373   : > { %v1569_v59 = vadd.f32 %v1568_v27, %v1567_v1  ;;  %v3585_v61 = vpop.f32.mrf.mxu1 }
 0x374   : > { %v1574_v29 = vsel %vm736_vm0, %v3585_v61, 0.0 }
 0x375   : > { %v1350_v57 = vpop.f32.mrf.mxu1  ;;  %v1571_v32 = vadd.f32 %v1570_v11, %v1569_v59 }
 0x376   : > { %v1572_v39 = vsel %vm736_vm0, %v1350_v57, 0.0 }
 0x377   : > { %v1573_v60 = vadd.f32 %v1572_v39, %v1571_v32  ;;  %v3588_v52 = vpop.f32.mrf.mxu1 }
 0x378   : > { %v1578_v62 = vsel %vm736_vm0, %v3588_v52, 0.0 }
 0x379   : > { %v1360_v58 = vpop.f32.mrf.mxu1  ;;  %v1575_v4 = vadd.f32 %v1574_v29, %v1573_v60 }
 0x37a   : > { %v1576_v6 = vsel %vm736_vm0, %v1360_v58, 0.0 }
 0x37b   : > { %v1577_v45 = vadd.f32 %v1576_v6, %v1575_v4  ;;  %v3591_v40 = vpop.f32.mrf.mxu1 }
 0x37c   : > { %v1582_v11 = vsel %vm736_vm0, %v3591_v40, 0.0 }
 0x37d   : > { %v1370_v50 = vpop.f32.mrf.mxu1  ;;  %v1579_v1 = vadd.f32 %v1578_v62, %v1577_v45 }
 0x37e   : > { %v1580_v12 = vsel %vm736_vm0, %v1370_v50, 0.0 }
 0x37f   : > { %v1581_v27 = vadd.f32 %v1580_v12, %v1579_v1  ;;  %v3594_v59 = vpop.f32.mrf.mxu1 }
 0x380   : > { %v1586_v29 = vsel %vm736_vm0, %v3594_v59, 0.0 }
 0x381   : > { %v1380_v57 = vpop.f32.mrf.mxu1  ;;  %v1583_v32 = vadd.f32 %v1582_v11, %v1581_v27 }
 0x382   : > { %v1584_v61 = vsel %vm736_vm0, %v1380_v57, 0.0 }
 0x383   : > { %v1585_v39 = vadd.f32 %v1584_v61, %v1583_v32  ;;  %v3597_v60 = vpop.f32.mrf.mxu1 }
 0x384   : > { %v1590_v62 = vsel %vm736_vm0, %v3597_v60, 0.0 }
 0x385   : > { %v1390_v58 = vpop.f32.mrf.mxu1  ;;  %v1587_v4 = vadd.f32 %v1586_v29, %v1585_v39 }
 0x386   : > { %v1588_v52 = vsel %vm736_vm0, %v1390_v58, 0.0 }
 0x387   : > { %v1589_v6 = vadd.f32 %v1588_v52, %v1587_v4  ;;  %v3600_v45 = vpop.f32.mrf.mxu1 }
 0x388   : > { %v1594_v11 = vsel %vm736_vm0, %v3600_v45, 0.0 }
 0x389   : > { %v1400_v50 = vpop.f32.mrf.mxu1  ;;  %v1591_v1 = vadd.f32 %v1590_v62, %v1589_v6 }
 0x38a   : > { %v1592_v40 = vsel %vm736_vm0, %v1400_v50, 0.0 }
 0x38b   : > { %v1593_v12 = vadd.f32 %v1592_v40, %v1591_v1  ;;  %v3603_v27 = vpop.f32.mrf.mxu1 }
 0x38c   : > { %v1598_v29 = vsel %vm736_vm0, %v3603_v27, 0.0 }
 0x38d   : > { %v1410_v57 = vpop.f32.mrf.mxu1  ;;  %v1595_v32 = vadd.f32 %v1594_v11, %v1593_v12 }
 0x38e   : > { %v1596_v59 = vsel %vm736_vm0, %v1410_v57, 0.0 }
 0x38f   : > { %v1597_v61 = vadd.f32 %v1596_v59, %v1595_v32  ;;  %v3606_v39 = vpop.f32.mrf.mxu1 }
 0x390   : > { %v1602_v62 = vsel %vm736_vm0, %v3606_v39, 0.0 }
 0x391   : > { %v1420_v58 = vpop.f32.mrf.mxu1  ;;  %v1599_v4 = vadd.f32 %v1598_v29, %v1597_v61 }
 0x392   : > { %v1600_v60 = vsel %vm736_vm0, %v1420_v58, 0.0 }
 0x393   : > { %v1601_v52 = vadd.f32 %v1600_v60, %v1599_v4  ;;  %v3609_v6 = vpop.f32.mrf.mxu1 }
 0x394   : > { %v1606_v11 = vsel %vm736_vm0, %v3609_v6, 0.0 }
 0x395   : > { %v1430_v50 = vpop.f32.mrf.mxu1  ;;  %v1603_v1 = vadd.f32 %v1602_v62, %v1601_v52 }
 0x396   : > { %v1604_v45 = vsel %vm736_vm0, %v1430_v50, 0.0 }
 0x397   : > { %v1605_v40 = vadd.f32 %v1604_v45, %v1603_v1  ;;  %v3612_v12 = vpop.f32.mrf.mxu1 }
 0x398   : > { %v1610_v29 = vsel %vm736_vm0, %v3612_v12, 0.0 }
 0x399   : > { %v1440_v57 = vpop.f32.mrf.mxu1  ;;  %v1607_v32 = vadd.f32 %v1606_v11, %v1605_v40 }
 0x39a   : > { %v1608_v27 = vsel %vm736_vm0, %v1440_v57, 0.0 }
 0x39b   : > { %v1609_v59 = vadd.f32 %v1608_v27, %v1607_v32  ;;  %v3615_v61 = vpop.f32.mrf.mxu1 }
 0x39c   : > { %v1614_v62 = vsel %vm736_vm0, %v3615_v61, 0.0 }
 0x39d   : > { %v1450_v58 = vpop.f32.mrf.mxu1  ;;  %v1611_v4 = vadd.f32 %v1610_v29, %v1609_v59 }
 0x39e   : > { %v1612_v39 = vsel %vm736_vm0, %v1450_v58, 0.0 }
 0x39f   : > { %v1613_v60 = vadd.f32 %v1612_v39, %v1611_v4  ;;  %v3618_v52 = vpop.f32.mrf.mxu1 }
 0x3a0   : > { %v1618_v11 = vsel %vm736_vm0, %v3618_v52, 0.0 }
 0x3a1   : > { %v1460_v50 = vpop.f32.mrf.mxu1  ;;  %v1615_v1 = vadd.f32 %v1614_v62, %v1613_v60 }
 0x3a2   : > { %v1616_v6 = vsel %vm736_vm0, %v1460_v50, 0.0 }
 0x3a3   : > { %v1617_v45 = vadd.f32 %v1616_v6, %v1615_v1  ;;  %v3621_v40 = vpop.f32.mrf.mxu1 }
 0x3a4   : > { %v1622_v29 = vsel %vm736_vm0, %v3621_v40, 0.0 }
 0x3a5   : > { %v1470_v57 = vpop.f32.mrf.mxu1  ;;  %v1619_v32 = vadd.f32 %v1618_v11, %v1617_v45 }
 0x3a6   : > { %v1620_v12 = vsel %vm736_vm0, %v1470_v57, 0.0 }
 0x3a7   : > { %v1621_v27 = vadd.f32 %v1620_v12, %v1619_v32  ;;  %v3624_v59 = vpop.f32.mrf.mxu1 }
 0x3a8   : > { %v1626_v62 = vsel %vm736_vm0, %v3624_v59, 0.0 }
 0x3a9   : > { %v1480_v58 = vpop.f32.mrf.mxu1  ;;  %v1623_v4 = vadd.f32 %v1622_v29, %v1621_v27 }
 0x3aa   : > { %v1624_v61 = vsel %vm736_vm0, %v1480_v58, 0.0 }
 0x3ab   : > { %v1625_v39 = vadd.f32 %v1624_v61, %v1623_v4  ;;  %v3627_v60 = vpop.f32.mrf.mxu1 }
 0x3ac   : > { %v1630_v11 = vsel %vm736_vm0, %v3627_v60, 0.0  ;;  %v3831_v60 = vld [vmem:[%s5851_s4 + $0x30] sm:$0xff]  }
 0x3ad   : > { %v1490_v50 = vpop.f32.mrf.mxu1  ;;  %v1627_v1 = vadd.f32 %v1626_v62, %v1625_v39 }
 0x3ae   : > { %v1628_v52 = vsel %vm736_vm0, %v1490_v50, 0.0  ;;  %v3832_v50 = vld [vmem:[%s5851_s4 + $0x28] sm:$0xff]  }
 0x3af   : > { %v1629_v6 = vadd.f32 %v1628_v52, %v1627_v1  ;;  %v3630_v45 = vpop.f32.mrf.mxu1  ;;  %v3835_v1 = vld [vmem:[%s5851_s4 + $0x10] sm:$0xff]   ;;  %v3836_v52 = vld [vmem:[%s5851_s4 + $0x8] sm:$0xff]  }
 0x3b0   : > { %v1634_v27 = vsel %vm736_vm0, %v3630_v45, 0.0 }
 0x3b1   : > { %v1500_v57 = vpop.f32.mrf.mxu1  ;;  %v1631_v32 = vadd.f32 %v1630_v11, %v1629_v6  ;;  %v3837_v6 = vld [vmem:[%s5851_s4] sm:$0xff]  }
 0x3b2   : > { %v1632_v40 = vsel %vm736_vm0, %v1500_v57, 0.0 }
 0x3b3   : > { %v1633_v12 = vadd.f32 %v1632_v40, %v1631_v32  ;;  %v6015_v40 = vsub.s32 0, %v4687_v3 }
 0x3b5   : > { %v1635_v29 = vadd.f32 %v1634_v27, %v1633_v12 }
 0x3b7   : > { %v1636_v58 = vrot.slane %v1635_v29, 4 }
 0x3b9   : > { %v1637_v4 = vadd.f32 %v1636_v58, %v1635_v29 }
 0x3bb   : > { %v1638_v61 = vrot.slane %v1637_v4, 2 }
 0x3bd   : > { %v1639_v59 = vadd.f32 %v1638_v61, %v1637_v4 }
 0x3bf   : > { %v1640_v28 = vrot.slane %v1639_v59, 1 }
 0x3c1   : > { %v1641_v39 = vadd.f32 %v1640_v28, %v1639_v59  ;;  %v3833_v28 = vld [vmem:[%s5851_s4 + $0x20] sm:$0xff]  }
 0x3c3   : > { %v1642_v62 = vmul.f32 0.00048828125, %v1641_v39 }
 0x3c5   : > { %3664 = vmatmul.mubr.msk.f32.vlgmr.msra.gmra.mxu0 %vm736_vm0, %v1642_v62 }
 0x3c6   : > { %3667 = vmatpush3.bf16.msra.mxu0 %v5089_v24  ;;  %v3834_v24 = vld [vmem:[%s5851_s4 + $0x18] sm:$0xff]  }
 0x3c7   : > { %3668 = vmatprep.subr.bf16.mxu0 %v3831_v60 }
 0x3ca   : > { %3669 = vmatpush3.bf16.msra.mxu0 %v3831_v60 }
 0x3cb   : > { %3670 = vmatprep.subr.bf16.mxu0 %v3832_v50 }
 0x3ce   : > { %3671 = vmatpush3.bf16.msra.mxu0 %v3832_v50 }
 0x3cf   : > { %3672 = vmatprep.subr.bf16.mxu0 %v3833_v28 }
 0x3d2   : > { %3673 = vmatpush3.bf16.msra.mxu0 %v3833_v28 }
 0x3d3   : > { %3674 = vmatprep.subr.bf16.mxu0 %v3834_v24 }
 0x3d6   : > { %3675 = vmatpush3.bf16.msra.mxu0 %v3834_v24 }
 0x3d7   : > { %3676 = vmatprep.subr.bf16.mxu0 %v3835_v1 }
 0x3da   : > { %3677 = vmatpush3.bf16.msra.mxu0 %v3835_v1 }
 0x3db   : > { %3678 = vmatprep.subr.bf16.mxu0 %v3836_v52 }
 0x3de   : > { %3679 = vmatpush3.bf16.msra.mxu0 %v3836_v52 }
 0x3df   : > { %3680 = vmatprep.subr.bf16.mxu0 %v3837_v6 }
 0x3e2   : > { %3681 = vmatpush3.bf16.msra.mxu0 %v3837_v6 }
 0x485   : > { %v1712_v45 = vpop.f32.mrf.mxu0 }
 0x486   : > { %v1713_v57 = vadd.f32 1e-06, %v1712_v45 }
 0x487   : > { %v3665_v11 = vpop.f32.mrf.mxu0 }
 0x488   : > { %3838 = vrsqrt.f32 %v1713_v57 }
 0x495   : > { %v3839_v32 = vpop.eup %3838 }
 0x496   : > { %v5173_v12 = vrot.slane %v3839_v32, %v6015_v40 }
 0x498   : > { %v1721_v27 = vmul.f32 %v5173_v12, %v4696_v8  ;;  %v1722_v29 = vmul.f32 %v5173_v12, %v4700_v9  ;;  %v1723_v58 = vmul.f32 %v5173_v12, %v4704_v10  ;;  %v1724_v4 = vmul.f32 %v5173_v12, %v4712_v13 }
 0x499   : > { %v1725_v61 = vmul.f32 %v5173_v12, %v4716_v14  ;;  %v1726_v3 = vmul.f32 %v5173_v12, %v4722_v16  ;;  %v5189_v59 = vmul.f32 %v5173_v12, %v4728_v18  ;;  %v5193_v8 = vmul.f32 %v5173_v12, %v4734_v23 }
 0x49a   : > { %v5197_v9 = vmul.f32 %v5173_v12, %v4740_v37  ;;  %v5201_v10 = vmul.f32 %v5173_v12, %v4746_v41  ;;  %v5205_v13 = vmul.f32 %v5173_v12, %v4752_v53  ;;  %v5209_v14 = vmul.f32 %v5173_v12, %v4758_v47 }
 0x49b   : > { %v1755_v16 = vmul.f32 %v5173_v12, %v4896_v19  ;;  %v1756_v18 = vmul.f32 %v5173_v12, %v4902_v44  ;;  %v1757_v23 = vmul.f32 %v5173_v12, %v4908_v48  ;;  %v1758_v37 = vmul.f32 %v5173_v12, %v4914_v2 }
 0x49c   : > { %v1759_v41 = vmul.f32 %v5173_v12, %v4920_v15  ;;  %v1760_v53 = vmul.f32 %v5173_v12, %v4926_v30  ;;  %v1761_v47 = vmul.f32 %v5173_v12, %v4932_v38  ;;  %v1762_v19 = vmul.f32 %v5173_v12, %v4938_v20 }
 0x49d   : > { %v1763_v44 = vmul.f32 %v5173_v12, %v4944_v49  ;;  %v1764_v48 = vmul.f32 %v5173_v12, %v4950_v36  ;;  %v1765_v2 = vmul.f32 %v5173_v12, %v4956_v54  ;;  %v1766_v15 = vmul.f32 %v5173_v12, %v4962_v7  ;;  %v5250_v7 = vld [vmem:[%s5849_s2] ss:$0 sm:$0xff] }
 0x49e   : > { %v1767_v30 = vmul.f32 %v5173_v12, %v4968_v26  ;;  %v1768_v38 = vmul.f32 %v5173_v12, %v4974_v42  ;;  %v1769_v20 = vmul.f32 %v5173_v12, %v4980_v21  ;;  %v1770_v49 = vmul.f32 %v5173_v12, %v4986_v63 }
 0x49f   : > { %v1771_v36 = vmul.f32 %v5173_v12, %v4992_v0  ;;  %v1772_v54 = vmul.f32 %v5173_v12, %v4998_v31  ;;  %v1773_v26 = vmul.f32 %v5173_v12, %v5004_v46  ;;  %v1774_v42 = vmul.f32 %v5173_v12, %v5010_v56 }
 0x4a0   : > { %v1775_v21 = vmul.f32 %v5173_v12, %v5016_v22  ;;  %v1776_v63 = vmul.f32 %v5173_v12, %v5022_v35  ;;  %v1777_v0 = vmul.f32 %v5173_v12, %v5028_v33  ;;  %v1778_v31 = vmul.f32 %v5173_v12, %v5034_v55 }
 0x4a1   : > { %v1779_v39 = vmul.f32 %v5173_v12, %v5040_v43  ;;  %v1780_v46 = vmul.f32 %v5173_v12, %v5046_v51  ;;  %v1781_v56 = vmul.f32 %v5173_v12, %v5052_v34  ;;  %v1782_v22 = vmul.f32 %v5173_v12, %v5058_v5 }
 0x4a2   : > { %v1783_v35 = vmul.f32 %v5173_v12, %v5064_v17  ;;  %v1784_v33 = vmul.f32 %v5173_v12, %v5070_v25  ;;  %v1792_v55 = vmul.f32 %v5250_v7, %v1721_v27  ;;  %v1793_v62 = vmul.f32 %v5250_v7, %v1722_v29 }
 0x4a3   : > { %v1794_v43 = vmul.f32 %v5250_v7, %v1723_v58  ;;  %v1795_v51 = vmul.f32 %v5250_v7, %v1724_v4  ;;  %v1796_v60 = vmul.f32 %v5250_v7, %v1725_v61  ;;  %v1797_v34 = vmul.f32 %v5250_v7, %v1726_v3  ;;  %v5339_v61 = vld [vmem:[%s5850_s3] ss:$0 sm:$0xff] }
 0x4a4   : > { %v5283_v5 = vmul.f32 %v5250_v7, %v1755_v16  ;;  %v5286_v17 = vmul.f32 %v5250_v7, %v1756_v18  ;;  %v5289_v25 = vmul.f32 %v5250_v7, %v1757_v23  ;;  %v5292_v50 = vmul.f32 %v5250_v7, %v1758_v37 }
 0x4a5   : > { %v5295_v28 = vmul.f32 %v5250_v7, %v1759_v41  ;;  %v5298_v24 = vmul.f32 %v5250_v7, %v1760_v53  ;;  %v5301_v1 = vmul.f32 %v5250_v7, %v1761_v47  ;;  %v5304_v52 = vmul.f32 %v5250_v7, %v1762_v19 }
 0x4a6   : > { %v5307_v6 = vmul.f32 %v5250_v7, %v1763_v44  ;;  %v5310_v45 = vmul.f32 %v5250_v7, %v1764_v48  ;;  %v5313_v11 = vmul.f32 %v5250_v7, %v1765_v2  ;;  %v5316_v57 = vmul.f32 %v5250_v7, %v1766_v15 }
 0x4a7   : > { %v5319_v32 = vmul.f32 %v5250_v7, %v1767_v30  ;;  %v5322_v40 = vmul.f32 %v5250_v7, %v1768_v38  ;;  %v5325_v27 = vmul.f32 %v5250_v7, %v1769_v20  ;;  %v5328_v29 = vmul.f32 %v5250_v7, %v1770_v49  ;;  %v6016_v49 = vld [vmem:[#allocation43_spill] sm:$0xff] }
 0x4a8   : > { %v5331_v58 = vmul.f32 %v5250_v7, %v1771_v36  ;;  %v5334_v4 = vmul.f32 %v5250_v7, %v1772_v54  ;;  %v5342_v3 = vmul.f32 %v5250_v7, %v1773_v26  ;;  %v5345_v16 = vmul.f32 %v5250_v7, %v1774_v42  ;;  %v6017_v54 = vld [vmem:[#allocation44_spill] sm:$0xff] }
 0x4a9   : > { %v5348_v18 = vmul.f32 %v5250_v7, %v1775_v21  ;;  %v5351_v23 = vmul.f32 %v5250_v7, %v1776_v63  ;;  %v5354_v37 = vmul.f32 %v5250_v7, %v1777_v0  ;;  %v5357_v41 = vmul.f32 %v5250_v7, %v1778_v31 }
 0x4aa   : > { %v5360_v53 = vmul.f32 %v5250_v7, %v1779_v39  ;;  %v5363_v47 = vmul.f32 %v5250_v7, %v1780_v46  ;;  %v5366_v19 = vmul.f32 %v5250_v7, %v1781_v56  ;;  %v5369_v44 = vmul.f32 %v5250_v7, %v1782_v22 }
 0x4ab   : > { %v5372_v48 = vmul.f32 %v5250_v7, %v1783_v35  ;;  %v5375_v2 = vmul.f32 %v5250_v7, %v1784_v33  ;;  %v1865_v15 = vadd.f32 %v5339_v61, %v1794_v43  ;;  %v1866_v30 = vadd.f32 %v5339_v61, %v1795_v51 }
 0x4ac   : > { %v1863_v38 = vadd.f32 %v5339_v61, %v1792_v55  ;;  %v1864_v20 = vadd.f32 %v5339_v61, %v1793_v62  ;;  %v1733_v36 = vmul.f32 %v5173_v12, %v6016_v49  ;;  %v1734_v26 = vmul.f32 %v5173_v12, %v6017_v54  ;;  %v6022_v54 = vld [vmem:[#allocation14_spill] sm:$0xff] }
 0x4ad   : > { %v1867_v42 = vadd.f32 %v5339_v61, %v1796_v60  ;;  %v1868_v21 = vadd.f32 %v5339_v61, %v1797_v34  ;;  %v1928_v0 = vpack.c.bf16 %v1866_v30, %v1865_v15  ;;  %v1798_v31 = vmul.f32 %v5250_v7, %v5189_v59  ;;  %v6021_v60 = vld [vmem:[#allocation13_spill] sm:$0xff] }
 0x4ae   : > { %v1927_v63 = vpack.c.bf16 %v1864_v20, %v1863_v38  ;;  %v1799_v39 = vmul.f32 %v5250_v7, %v5193_v8  ;;  %v1800_v46 = vmul.f32 %v5250_v7, %v5197_v9  ;;  %v1801_v56 = vmul.f32 %v5250_v7, %v5201_v10  ;;  %v6018_v8 = vld [vmem:[#allocation45_spill] sm:$0xff]  ;;  %v6019_v9 = vld [vmem:[#allocation46_spill] sm:$0xff] }
 0x4af   : > { %v1929_v22 = vpack.c.bf16 %v1868_v21, %v1867_v42  ;;  %v1802_v35 = vmul.f32 %v5250_v7, %v5205_v13  ;;  %v1803_v33 = vmul.f32 %v5250_v7, %v5209_v14  ;;  %v1804_v55 = vmul.f32 %v5250_v7, %v1733_v36  ;;  %v6020_v10 = vld [vmem:[#allocation10_spill] sm:$0xff]  ;;  %v6023_v42 = vld [vmem:[#allocation17_spill] sm:$0xff] }
 0x4b0   : > { %3682 = vmatprep.mubr.bf16.mxu0 %v1927_v63  ;;  %v1805_v59 = vmul.f32 %v5250_v7, %v1734_v26  ;;  %v1735_v62 = vmul.f32 %v5173_v12, %v6018_v8  ;;  %v1736_v43 = vmul.f32 %v5173_v12, %v6019_v9  ;;  %v1737_v51 = vmul.f32 %v5173_v12, %v6020_v10  ;;  %v6024_v63 = vld [vmem:[#allocation18_spill] sm:$0xff] }
 0x4b1   : > { %3683 = vmatmul.mubr.bf16.vlgmr.msra.gmra.mxu0 %v1928_v0  ;;  %v1738_v13 = vmul.f32 %v5173_v12, %v6021_v60  ;;  %v1869_v14 = vadd.f32 %v5339_v61, %v1798_v31  ;;  %v1870_v34 = vadd.f32 %v5339_v61, %v1799_v39  ;;  %v1871_v15 = vadd.f32 %v5339_v61, %v1800_v46 }
 0x4b2   : > { %3686 = vmatprep.mubr.bf16.mxu0 %v1929_v22  ;;  %v1872_v30 = vadd.f32 %v5339_v61, %v1801_v56  ;;  %v1873_v38 = vadd.f32 %v5339_v61, %v1802_v35  ;;  %v1874_v20 = vadd.f32 %v5339_v61, %v1803_v33  ;;  %v1875_v49 = vadd.f32 %v5339_v61, %v1804_v55 }
 0x4b3   : > { %v1876_v36 = vadd.f32 %v5339_v61, %v1805_v59  ;;  %v5419_v26 = vmul.f32 %v5173_v12, %v6022_v54  ;;  %v5423_v21 = vmul.f32 %v5173_v12, %v6023_v42  ;;  %v5427_v0 = vmul.f32 %v5173_v12, %v6024_v63  ;;  %v6025_v42 = vld [vmem:[#allocation21_spill] sm:$0xff] }
 0x4b4   : > { %v1806_v31 = vmul.f32 %v5250_v7, %v1735_v62  ;;  %v1807_v39 = vmul.f32 %v5250_v7, %v1736_v43  ;;  %v1808_v46 = vmul.f32 %v5250_v7, %v1737_v51  ;;  %v1809_v56 = vmul.f32 %v5250_v7, %v1738_v13 }
 0x4b5   : > { %v1930_v22 = vpack.c.bf16 %v1870_v34, %v1869_v14  ;;  %v1931_v35 = vpack.c.bf16 %v1872_v30, %v1871_v15  ;;  %v5435_v33 = vadd.f32 %v5339_v61, %v5283_v5  ;;  %v5439_v55 = vadd.f32 %v5339_v61, %v5286_v17 }
 0x4b6   : > { %v5443_v59 = vadd.f32 %v5339_v61, %v5289_v25  ;;  %v1932_v8 = vpack.c.bf16 %v1874_v20, %v1873_v38  ;;  %v1933_v62 = vpack.c.bf16 %v1876_v36, %v1875_v49  ;;  %v5447_v9 = vadd.f32 %v5339_v61, %v5292_v50  ;;  %v6032_v20 = vld [vmem:[#allocation34_spill] sm:$0xff] }
 0x4b7   : > { %v5451_v43 = vadd.f32 %v5339_v61, %v5295_v28  ;;  %v1944_v5 = vpack.c.bf16 %v5439_v55, %v5435_v33  ;;  %v5457_v17 = vadd.f32 %v5339_v61, %v5298_v24  ;;  %v5461_v25 = vadd.f32 %v5339_v61, %v5301_v1 }
 0x4b8   : > { %v5465_v50 = vadd.f32 %v5339_v61, %v5304_v52  ;;  %v1945_v28 = vpack.c.bf16 %v5447_v9, %v5443_v59  ;;  %v5471_v10 = vadd.f32 %v5339_v61, %v5307_v6  ;;  %v5475_v51 = vadd.f32 %v5339_v61, %v5310_v45  ;;  %v5696_v9 = vld [vmem:[%s5852_s5] ss:$0 sm:$0xff] }
 0x4b9   : > { %3687 = vmatmul.mubr.bf16.gmra.mxu0 %v1930_v22  ;;  %v5479_v24 = vadd.f32 %v5339_v61, %v5313_v11  ;;  %v1946_v1 = vpack.c.bf16 %v5457_v17, %v5451_v43  ;;  %v5487_v60 = vadd.f32 %v5339_v61, %v5316_v57  ;;  %v5491_v6 = vadd.f32 %v5339_v61, %v5319_v32 }
 0x4ba   : > { %3690 = vmatprep.mubr.bf16.mxu0 %v1931_v35  ;;  %v1947_v52 = vpack.c.bf16 %v5465_v50, %v5461_v25  ;;  %v1948_v45 = vpack.c.bf16 %v5475_v51, %v5471_v10  ;;  %v5497_v11 = vadd.f32 %v5339_v61, %v5322_v40  ;;  %v5501_v13 = vadd.f32 %v5339_v61, %v5325_v27 }
 0x4bb   : > { %v5505_v14 = vadd.f32 %v5339_v61, %v5328_v29  ;;  %v1949_v57 = vpack.c.bf16 %v5487_v60, %v5479_v24  ;;  %v5511_v32 = vadd.f32 %v5339_v61, %v5331_v58  ;;  %v5515_v34 = vadd.f32 %v5339_v61, %v5334_v4 }
 0x4bc   : > { %v5519_v40 = vadd.f32 %v5339_v61, %v5342_v3  ;;  %v1950_v27 = vpack.c.bf16 %v5497_v11, %v5491_v6  ;;  %v5527_v15 = vadd.f32 %v5339_v61, %v5345_v16  ;;  %v5531_v58 = vadd.f32 %v5339_v61, %v5348_v18 }
 0x4bd   : > { %v1951_v29 = vpack.c.bf16 %v5505_v14, %v5501_v13  ;;  %v1952_v4 = vpack.c.bf16 %v5515_v34, %v5511_v32  ;;  %v5537_v3 = vadd.f32 %v5339_v61, %v5351_v23  ;;  %v5541_v30 = vadd.f32 %v5339_v61, %v5354_v37 }
 0x4be   : > { %v5545_v38 = vadd.f32 %v5339_v61, %v5357_v41  ;;  %v1953_v16 = vpack.c.bf16 %v5527_v15, %v5519_v40  ;;  %v5551_v18 = vadd.f32 %v5339_v61, %v5360_v53  ;;  %v5555_v23 = vadd.f32 %v5339_v61, %v5363_v47 }
 0x4bf   : > { %v5559_v37 = vadd.f32 %v5339_v61, %v5366_v19  ;;  %v1954_v41 = vpack.c.bf16 %v5537_v3, %v5531_v58  ;;  %v5567_v49 = vadd.f32 %v5339_v61, %v5369_v44  ;;  %v5571_v53 = vadd.f32 %v5339_v61, %v5372_v48  ;;  %v6027_v48 = vld [vmem:[#allocation25_spill] sm:$0xff] }
 0x4c0   : > { %v1877_v47 = vadd.f32 %v5339_v61, %v1806_v31  ;;  %v1878_v19 = vadd.f32 %v5339_v61, %v1807_v39  ;;  %v5579_v54 = vadd.f32 %v5339_v61, %v5375_v2  ;;  %v1742_v63 = vmul.f32 %v5173_v12, %v6025_v42 }
 0x4c1   : > { %3691 = vmatmul.mubr.bf16.gmra.mxu0 %v1932_v8  ;;  %v1879_v44 = vadd.f32 %v5339_v61, %v1808_v46  ;;  %v1880_v22 = vadd.f32 %v5339_v61, %v1809_v56  ;;  %v1810_v39 = vmul.f32 %v5250_v7, %v5419_v26  ;;  %v1811_v2 = vmul.f32 %v5250_v7, %v5423_v21  ;;  %v6026_v56 = vld [vmem:[#allocation22_spill] sm:$0xff] }
 0x4c2   : > { %3694 = vmatprep.mubr.bf16.mxu0 %v1933_v62  ;;  %v1934_v35 = vpack.c.bf16 %v1878_v19, %v1877_v47  ;;  %v1812_v8 = vmul.f32 %v5250_v7, %v5427_v0  ;;  %v1813_v46 = vmul.f32 %v5250_v7, %v1742_v63  ;;  %v1743_v42 = vmul.f32 %v5173_v12, %v6026_v56  ;;  %v6028_v21 = vld [vmem:[#allocation26_spill] sm:$0xff]  ;;  %v6029_v19 = vld [vmem:[#allocation29_spill] sm:$0xff] }
 0x4c3   : > { %v1935_v62 = vpack.c.bf16 %v1880_v22, %v1879_v44  ;;  %v1744_v31 = vmul.f32 %v5173_v12, %v6027_v48  ;;  %v1881_v26 = vadd.f32 %v5339_v61, %v1810_v39  ;;  %v1882_v36 = vadd.f32 %v5339_v61, %v1811_v2  ;;  %v6030_v56 = vld [vmem:[#allocation30_spill] sm:$0xff] }
 0x4c4   : > { %v1745_v47 = vmul.f32 %v5173_v12, %v6028_v21  ;;  %v1746_v0 = vmul.f32 %v5173_v12, %v6029_v19  ;;  %v1883_v63 = vadd.f32 %v5339_v61, %v1812_v8  ;;  %v1884_v44 = vadd.f32 %v5339_v61, %v1813_v46  ;;  %v6031_v19 = vld [vmem:[#allocation33_spill] sm:$0xff] }
 0x4c5   : > { %v1814_v22 = vmul.f32 %v5250_v7, %v1743_v42  ;;  %v1747_v21 = vmul.f32 %v5173_v12, %v6030_v56  ;;  %v1748_v8 = vmul.f32 %v5173_v12, %v6031_v19  ;;  %v6035_v19 = vld [vmem:[#allocation41_spill] sm:$0xff]  ;;  %v6040_v33 = vpack.c.bf16 %v5567_v49, %v5559_v37 }
 0x4c6   : > { %v1816_v48 = vmul.f32 %v5250_v7, %v1745_v47  ;;  %v1817_v39 = vmul.f32 %v5250_v7, %v1746_v0  ;;  %v1937_v2 = vpack.c.bf16 %v1884_v44, %v1883_v63  ;;  %v6041_v55 = vpack.c.bf16 %v5579_v54, %v5571_v53 }
 0x4c7   : > { %v1885_v46 = vadd.f32 %v5339_v61, %v1814_v22  ;;  %v1818_v63 = vmul.f32 %v5250_v7, %v1747_v21  ;;  %v1819_v44 = vmul.f32 %v5250_v7, %v1748_v8 }
 0x4c8   : > { %v1887_v47 = vadd.f32 %v5339_v61, %v1816_v48  ;;  %v1888_v0 = vadd.f32 %v5339_v61, %v1817_v39  ;;  %v1752_v48 = vmul.f32 %v5173_v12, %v6035_v19 }
 0x4c9   : > { %3695 = vmatmul.mubr.bf16.gmra.mxu0 %v1934_v35  ;;  %v1815_v35 = vmul.f32 %v5250_v7, %v1744_v31  ;;  %v6033_v31 = vld [vmem:[#allocation37_spill] sm:$0xff]  ;;  %v1889_v39 = vadd.f32 %v5339_v61, %v1818_v63  ;;  %v1890_v21 = vadd.f32 %v5339_v61, %v1819_v44 }
 0x4ca   : > { %3698 = vmatprep.mubr.bf16.mxu0 %v1935_v62  ;;  %v1936_v62 = vpack.c.bf16 %v1882_v36, %v1881_v26  ;;  %v1749_v36 = vmul.f32 %v5173_v12, %v6032_v20  ;;  %v1750_v26 = vmul.f32 %v5173_v12, %v6033_v31  ;;  %v6034_v20 = vld [vmem:[#allocation38_spill] sm:$0xff]  ;;  %v6036_v31 = vld [vmem:[#allocation47_spill] sm:$0xff] }
 0x4cb   : > { %v1886_v42 = vadd.f32 %v5339_v61, %v1815_v35  ;;  %v1939_v35 = vpack.c.bf16 %v1888_v0, %v1887_v47  ;;  %v1751_v56 = vmul.f32 %v5173_v12, %v6034_v20  ;;  %v1753_v8 = vmul.f32 %v5173_v12, %v6036_v31 }
 0x4cc   : > { %v1821_v22 = vmul.f32 %v5250_v7, %v1750_v26  ;;  %v1823_v0 = vmul.f32 %v5250_v7, %v1752_v48 }
 0x4cd   : > { %v1822_v47 = vmul.f32 %v5250_v7, %v1751_v56 }
 0x4ce   : > { %v1892_v26 = vadd.f32 %v5339_v61, %v1821_v22 }
 0x4cf   : > { %v1893_v20 = vadd.f32 %v5339_v61, %v1822_v47 }
 0x4d1   : > { %3699 = vmatmul.mubr.bf16.gmra.mxu0 %v1936_v62  ;;  %v1938_v62 = vpack.c.bf16 %v1886_v42, %v1885_v46  ;;  %v6037_v46 = vld [vmem:[#allocation48_spill] sm:$0xff] }
 0x4d2   : > { %3702 = vmatprep.mubr.bf16.mxu0 %v1937_v2  ;;  %v1820_v2 = vmul.f32 %v5250_v7, %v1749_v36  ;;  %v1754_v42 = vmul.f32 %v5173_v12, %v6037_v46  ;;  %v1894_v12 = vadd.f32 %v5339_v61, %v1823_v0 }
 0x4d4   : > { %v1891_v36 = vadd.f32 %v5339_v61, %v1820_v2  ;;  %v1825_v63 = vmul.f32 %v5250_v7, %v1754_v42  ;;  %v1942_v19 = vpack.c.bf16 %v1894_v12, %v1893_v20 }
 0x4d6   : > { %v1941_v44 = vpack.c.bf16 %v1892_v26, %v1891_v36  ;;  %v1896_v22 = vadd.f32 %v5339_v61, %v1825_v63 }
 0x4d9   : > { %3703 = vmatmul.mubr.bf16.gmra.mxu0 %v1938_v62  ;;  %v1940_v62 = vpack.c.bf16 %v1890_v21, %v1889_v39 }
 0x4da   : > { %3706 = vmatprep.mubr.bf16.mxu0 %v1939_v35  ;;  %v1824_v35 = vmul.f32 %v5250_v7, %v1753_v8  ;;  %v6038_v7 = vpack.c.bf16 %v5545_v38, %v5541_v30 }
 0x4dc   : > { %v1895_v2 = vadd.f32 %v5339_v61, %v1824_v35  ;;  %v6039_v61 = vpack.c.bf16 %v5555_v23, %v5551_v18 }
 0x4de   : > { %v1943_v56 = vpack.c.bf16 %v1896_v22, %v1895_v2 }
 0x4e1   : > { %3707 = vmatmul.mubr.bf16.gmra.mxu0 %v1940_v62 }
 0x4e2   : > { %3710 = vmatprep.mubr.bf16.mxu0 %v1941_v44 }
 0x4e9   : > { %3711 = vmatmul.mubr.bf16.gmra.mxu0 %v1942_v19 }
 0x4ea   : > { %3714 = vmatprep.mubr.bf16.mxu0 %v1943_v56 }
 0x4f1   : > { %3715 = vmatmul.mubr.bf16.gmra.mxu0 %v1944_v5 }
 0x4f2   : > { %3718 = vmatprep.mubr.bf16.mxu0 %v1945_v28 }
 0x4f9   : > { %3719 = vmatmul.mubr.bf16.gmra.mxu0 %v1946_v1 }
 0x4fa   : > { %3722 = vmatprep.mubr.bf16.mxu0 %v1947_v52 }
 0x501   : > { %3723 = vmatmul.mubr.bf16.gmra.mxu0 %v1948_v45 }
 0x502   : > { %3726 = vmatprep.mubr.bf16.mxu0 %v1949_v57 }
 0x509   : > { %3727 = vmatmul.mubr.bf16.gmra.mxu0 %v1950_v27 }
 0x50a   : > { %3730 = vmatprep.mubr.bf16.mxu0 %v1951_v29 }
 0x511   : > { %3731 = vmatmul.mubr.bf16.gmra.mxu0 %v1952_v4 }
 0x512   : > { %3734 = vmatprep.mubr.bf16.mxu0 %v1953_v16 }
 0x519   : > { %3735 = vmatmul.mubr.bf16.gmra.mxu0 %v1954_v41 }
 0x51a   : > { %3738 = vmatprep.mubr.bf16.mxu0 %v6038_v7 }
 0x521   : > { %3739 = vmatmul.mubr.bf16.gmra.mxu0 %v6039_v61 }
 0x522   : > { %3742 = vmatprep.mubr.bf16.mxu0 %v6040_v33 }
 0x529   : > { %3743 = vmatmul.mubr.bf16.gmra.mxu0 %v6041_v55 }
 0x571   : > { %v3684_v59 = vpop.f32.mrf.mxu0 }
 0x572   : > { %v2073_v17 = vadd.f32 %v3684_v59, %v5696_v9 }
 0x573   : > { %v2064_v43 = vpop.f32.mrf.mxu0 }
 0x574   : > { %v2065_v28 = vadd.f32 %v5696_v9, %v2064_v43 }
 0x575   : > { %v3685_v5 = vpop.f32.mrf.mxu0 }
 0x576   : > { %v2076_v25 = vadd.f32 %v3685_v5, %v5696_v9 }
 0x577   : > { %v2067_v50 = vpop.f32.mrf.mxu0 }
 0x578   : > { %v2923_v10 = vpack.c.bf16 %v2076_v25, %v2073_v17  ;;  %v2068_v51 = vadd.f32 %v5696_v9, %v2067_v50 }
 0x579   : > { %v3688_v24 = vpop.f32.mrf.mxu0 }
 0x57a   : > { %3075 = vst [vmem:[%s5703_s18 + $0x8] sm:$0xff] %v2923_v10   ;;  %v2918_v1 = vpack.c.bf16 %v2068_v51, %v2065_v28  ;;  %v2089_v6 = vadd.f32 %v3688_v24, %v5696_v9 }
 0x57b   : > { %v2080_v52 = vpop.f32.mrf.mxu0 }
 0x57c   : > { %2919 = vst [vmem:[%s5703_s18] sm:$0xff] %v2918_v1   ;;  %v2081_v13 = vadd.f32 %v5696_v9, %v2080_v52 }
 0x57d   : > { %v3689_v60 = vpop.f32.mrf.mxu0 }
 0x57e   : > { %v2092_v45 = vadd.f32 %v3689_v60, %v5696_v9 }
 0x57f   : > { %v2083_v11 = vpop.f32.mrf.mxu0 }
 0x580   : > { %v2933_v14 = vpack.c.bf16 %v2092_v45, %v2089_v6  ;;  %v2084_v57 = vadd.f32 %v5696_v9, %v2083_v11 }
 0x581   : > { %v3692_v32 = vpop.f32.mrf.mxu0 }
 0x582   : > { %3077 = vst [vmem:[%s5703_s18 + $0x18] sm:$0xff] %v2933_v14   ;;  %v2928_v34 = vpack.c.bf16 %v2084_v57, %v2081_v13  ;;  %v2105_v29 = vadd.f32 %v3692_v32, %v5696_v9 }
 0x583   : > { %v2096_v40 = vpop.f32.mrf.mxu0 }
 0x584   : > { %3076 = vst [vmem:[%s5703_s18 + $0x10] sm:$0xff] %v2928_v34   ;;  %v2097_v4 = vadd.f32 %v5696_v9, %v2096_v40 }
 0x585   : > { %v3693_v27 = vpop.f32.mrf.mxu0 }
 0x586   : > { %v2108_v15 = vadd.f32 %v3693_v27, %v5696_v9 }
 0x587   : > { %v2099_v58 = vpop.f32.mrf.mxu0 }
 0x588   : > { %v2943_v3 = vpack.c.bf16 %v2108_v15, %v2105_v29  ;;  %v2100_v30 = vadd.f32 %v5696_v9, %v2099_v58 }
 0x589   : > { %v3696_v38 = vpop.f32.mrf.mxu0 }
 0x58a   : > { %3079 = vst [vmem:[%s5703_s18 + $0x28] sm:$0xff] %v2943_v3   ;;  %v2938_v16 = vpack.c.bf16 %v2100_v30, %v2097_v4  ;;  %v2121_v37 = vadd.f32 %v3696_v38, %v5696_v9 }
 0x58b   : > { %v2112_v18 = vpop.f32.mrf.mxu0 }
 0x58c   : > { %3078 = vst [vmem:[%s5703_s18 + $0x20] sm:$0xff] %v2938_v16   ;;  %v2113_v53 = vadd.f32 %v5696_v9, %v2112_v18 }
 0x58d   : > { %v3697_v23 = vpop.f32.mrf.mxu0 }
 0x58e   : > { %v2124_v41 = vadd.f32 %v3697_v23, %v5696_v9 }
 0x58f   : > { %v2115_v49 = vpop.f32.mrf.mxu0 }
 0x590   : > { %v2953_v54 = vpack.c.bf16 %v2124_v41, %v2121_v37  ;;  %v2116_v48 = vadd.f32 %v5696_v9, %v2115_v49 }
 0x591   : > { %v3700_v39 = vpop.f32.mrf.mxu0 }
 0x592   : > { %3081 = vst [vmem:[%s5703_s18 + $0x38] sm:$0xff] %v2953_v54   ;;  %v2948_v21 = vpack.c.bf16 %v2116_v48, %v2113_v53  ;;  %v2137_v46 = vadd.f32 %v3700_v39, %v5696_v9 }
 0x593   : > { %v2128_v31 = vpop.f32.mrf.mxu0 }
 0x594   : > { %3080 = vst [vmem:[%s5703_s18 + $0x30] sm:$0xff] %v2948_v21   ;;  %v2129_v26 = vadd.f32 %v5696_v9, %v2128_v31 }
 0x595   : > { %v3701_v8 = vpop.f32.mrf.mxu0 }
 0x596   : > { %v2140_v42 = vadd.f32 %v3701_v8, %v5696_v9 }
 0x597   : > { %v2131_v36 = vpop.f32.mrf.mxu0 }
 0x598   : > { %v2963_v47 = vpack.c.bf16 %v2140_v42, %v2137_v46  ;;  %v2132_v0 = vadd.f32 %v5696_v9, %v2131_v36 }
 0x599   : > { %v3704_v62 = vpop.f32.mrf.mxu0 }
 0x59a   : > { %3083 = vst [vmem:[%s5703_s18 + $0x48] sm:$0xff] %v2963_v47   ;;  %v2958_v35 = vpack.c.bf16 %v2132_v0, %v2129_v26  ;;  %v2153_v20 = vadd.f32 %v3704_v62, %v5696_v9 }
 0x59b   : > { %v2144_v63 = vpop.f32.mrf.mxu0 }
 0x59c   : > { %3082 = vst [vmem:[%s5703_s18 + $0x40] sm:$0xff] %v2958_v35   ;;  %v2145_v22 = vadd.f32 %v5696_v9, %v2144_v63 }
 0x59d   : > { %v3705_v44 = vpop.f32.mrf.mxu0 }
 0x59e   : > { %v2156_v12 = vadd.f32 %v3705_v44, %v5696_v9 }
 0x59f   : > { %v2147_v2 = vpop.f32.mrf.mxu0 }
 0x5a0   : > { %v2973_v19 = vpack.c.bf16 %v2156_v12, %v2153_v20  ;;  %v2148_v56 = vadd.f32 %v5696_v9, %v2147_v2 }
 0x5a1   : > { %v3708_v7 = vpop.f32.mrf.mxu0 }
 0x5a2   : > { %3085 = vst [vmem:[%s5703_s18 + $0x58] sm:$0xff] %v2973_v19   ;;  %v2968_v61 = vpack.c.bf16 %v2148_v56, %v2145_v22  ;;  %v2169_v59 = vadd.f32 %v3708_v7, %v5696_v9 }
 0x5a3   : > { %v2160_v33 = vpop.f32.mrf.mxu0 }
 0x5a4   : > { %3084 = vst [vmem:[%s5703_s18 + $0x50] sm:$0xff] %v2968_v61   ;;  %v2161_v17 = vadd.f32 %v5696_v9, %v2160_v33 }
 0x5a5   : > { %v3709_v55 = vpop.f32.mrf.mxu0 }
 0x5a6   : > { %v2172_v43 = vadd.f32 %v3709_v55, %v5696_v9 }
 0x5a7   : > { %v2163_v5 = vpop.f32.mrf.mxu0 }
 0x5a8   : > { %v2983_v25 = vpack.c.bf16 %v2172_v43, %v2169_v59  ;;  %v2164_v50 = vadd.f32 %v5696_v9, %v2163_v5 }
 0x5a9   : > { %v3712_v28 = vpop.f32.mrf.mxu0 }
 0x5aa   : > { %3087 = vst [vmem:[%s5703_s18 + $0x68] sm:$0xff] %v2983_v25   ;;  %v2978_v10 = vpack.c.bf16 %v2164_v50, %v2161_v17  ;;  %v2185_v1 = vadd.f32 %v3712_v28, %v5696_v9 }
 0x5ab   : > { %v2176_v51 = vpop.f32.mrf.mxu0 }
 0x5ac   : > { %3086 = vst [vmem:[%s5703_s18 + $0x60] sm:$0xff] %v2978_v10   ;;  %v2177_v6 = vadd.f32 %v5696_v9, %v2176_v51 }
 0x5ad   : > { %v3713_v24 = vpop.f32.mrf.mxu0 }
 0x5ae   : > { %v2188_v52 = vadd.f32 %v3713_v24, %v5696_v9 }
 0x5af   : > { %v2179_v60 = vpop.f32.mrf.mxu0 }
 0x5b0   : > { %v2993_v45 = vpack.c.bf16 %v2188_v52, %v2185_v1  ;;  %v2180_v11 = vadd.f32 %v5696_v9, %v2179_v60 }
 0x5b1   : > { %v3716_v13 = vpop.f32.mrf.mxu0 }
 0x5b2   : > { %3089 = vst [vmem:[%s5703_s18 + $0x78] sm:$0xff] %v2993_v45   ;;  %v2988_v14 = vpack.c.bf16 %v2180_v11, %v2177_v6  ;;  %v2201_v34 = vadd.f32 %v3716_v13, %v5696_v9 }
 0x5b3   : > { %v2192_v57 = vpop.f32.mrf.mxu0 }
 0x5b4   : > { %3088 = vst [vmem:[%s5703_s18 + $0x70] sm:$0xff] %v2988_v14   ;;  %v2193_v29 = vadd.f32 %v5696_v9, %v2192_v57 }
 0x5b5   : > { %v3717_v32 = vpop.f32.mrf.mxu0 }
 0x5b6   : > { %v2204_v40 = vadd.f32 %v3717_v32, %v5696_v9 }
 0x5b7   : > { %v2195_v27 = vpop.f32.mrf.mxu0 }
 0x5b8   : > { %v3003_v15 = vpack.c.bf16 %v2204_v40, %v2201_v34  ;;  %v2196_v58 = vadd.f32 %v5696_v9, %v2195_v27 }
 0x5b9   : > { %v3720_v4 = vpop.f32.mrf.mxu0 }
 0x5ba   : > { %3091 = vst [vmem:[%s5703_s18 + $0x88] sm:$0xff] %v3003_v15   ;;  %v2998_v3 = vpack.c.bf16 %v2196_v58, %v2193_v29  ;;  %v2217_v16 = vadd.f32 %v3720_v4, %v5696_v9 }
 0x5bb   : > { %v2208_v30 = vpop.f32.mrf.mxu0 }
 0x5bc   : > { %3090 = vst [vmem:[%s5703_s18 + $0x80] sm:$0xff] %v2998_v3   ;;  %v2209_v37 = vadd.f32 %v5696_v9, %v2208_v30 }
 0x5bd   : > { %v3721_v38 = vpop.f32.mrf.mxu0 }
 0x5be   : > { %v2220_v18 = vadd.f32 %v3721_v38, %v5696_v9 }
 0x5bf   : > { %v2211_v23 = vpop.f32.mrf.mxu0 }
 0x5c0   : > { %v3013_v41 = vpack.c.bf16 %v2220_v18, %v2217_v16  ;;  %v2212_v49 = vadd.f32 %v5696_v9, %v2211_v23 }
 0x5c1   : > { %v3724_v53 = vpop.f32.mrf.mxu0 }
 0x5c2   : > { %3093 = vst [vmem:[%s5703_s18 + $0x98] sm:$0xff] %v3013_v41   ;;  %v3008_v54 = vpack.c.bf16 %v2212_v49, %v2209_v37  ;;  %v2233_v21 = vadd.f32 %v3724_v53, %v5696_v9 }
 0x5c3   : > { %v2224_v48 = vpop.f32.mrf.mxu0 }
 0x5c4   : > { %3092 = vst [vmem:[%s5703_s18 + $0x90] sm:$0xff] %v3008_v54   ;;  %v2225_v46 = vadd.f32 %v5696_v9, %v2224_v48 }
 0x5c5   : > { %v3725_v39 = vpop.f32.mrf.mxu0 }
 0x5c6   : > { %v2236_v31 = vadd.f32 %v3725_v39, %v5696_v9 }
 0x5c7   : > { %v2227_v8 = vpop.f32.mrf.mxu0 }
 0x5c8   : > { %v3023_v42 = vpack.c.bf16 %v2236_v31, %v2233_v21  ;;  %v2228_v36 = vadd.f32 %v5696_v9, %v2227_v8 }
 0x5c9   : > { %v3728_v26 = vpop.f32.mrf.mxu0 }
 0x5ca   : > { %3095 = vst [vmem:[%s5703_s18 + $0xa8] sm:$0xff] %v3023_v42   ;;  %v3018_v47 = vpack.c.bf16 %v2228_v36, %v2225_v46  ;;  %v2249_v35 = vadd.f32 %v3728_v26, %v5696_v9 }
 0x5cb   : > { %v2240_v0 = vpop.f32.mrf.mxu0 }
 0x5cc   : > { %3094 = vst [vmem:[%s5703_s18 + $0xa0] sm:$0xff] %v3018_v47   ;;  %v2241_v20 = vadd.f32 %v5696_v9, %v2240_v0 }
 0x5cd   : > { %v3729_v62 = vpop.f32.mrf.mxu0 }
 0x5ce   : > { %v2252_v63 = vadd.f32 %v3729_v62, %v5696_v9 }
 0x5cf   : > { %v2243_v44 = vpop.f32.mrf.mxu0 }
 0x5d0   : > { %v3033_v12 = vpack.c.bf16 %v2252_v63, %v2249_v35  ;;  %v2244_v2 = vadd.f32 %v5696_v9, %v2243_v44 }
 0x5d1   : > { %v3732_v22 = vpop.f32.mrf.mxu0 }
 0x5d2   : > { %3097 = vst [vmem:[%s5703_s18 + $0xb8] sm:$0xff] %v3033_v12   ;;  %v3028_v19 = vpack.c.bf16 %v2244_v2, %v2241_v20  ;;  %v2265_v61 = vadd.f32 %v3732_v22, %v5696_v9 }
 0x5d3   : > { %v2256_v56 = vpop.f32.mrf.mxu0 }
 0x5d4   : > { %3096 = vst [vmem:[%s5703_s18 + $0xb0] sm:$0xff] %v3028_v19   ;;  %v2257_v59 = vadd.f32 %v5696_v9, %v2256_v56 }
 0x5d5   : > { %v3733_v7 = vpop.f32.mrf.mxu0 }
 0x5d6   : > { %v2268_v33 = vadd.f32 %v3733_v7, %v5696_v9 }
 0x5d7   : > { %v2259_v55 = vpop.f32.mrf.mxu0 }
 0x5d8   : > { %v3043_v43 = vpack.c.bf16 %v2268_v33, %v2265_v61  ;;  %v2260_v5 = vadd.f32 %v5696_v9, %v2259_v55 }
 0x5d9   : > { %v3736_v17 = vpop.f32.mrf.mxu0 }
 0x5da   : > { %3099 = vst [vmem:[%s5703_s18 + $0xc8] sm:$0xff] %v3043_v43   ;;  %v3038_v25 = vpack.c.bf16 %v2260_v5, %v2257_v59  ;;  %v2281_v10 = vadd.f32 %v3736_v17, %v5696_v9 }
 0x5db   : > { %v2272_v50 = vpop.f32.mrf.mxu0 }
 0x5dc   : > { %3098 = vst [vmem:[%s5703_s18 + $0xc0] sm:$0xff] %v3038_v25   ;;  %v2273_v1 = vadd.f32 %v5696_v9, %v2272_v50 }
 0x5dd   : > { %v3737_v28 = vpop.f32.mrf.mxu0 }
 0x5de   : > { %v2284_v51 = vadd.f32 %v3737_v28, %v5696_v9 }
 0x5df   : > { %v2275_v24 = vpop.f32.mrf.mxu0 }
 0x5e0   : > { %v3053_v52 = vpack.c.bf16 %v2284_v51, %v2281_v10  ;;  %v2276_v60 = vadd.f32 %v5696_v9, %v2275_v24 }
 0x5e1   : > { %v3740_v6 = vpop.f32.mrf.mxu0 }
 0x5e2   : > { %3101 = vst [vmem:[%s5703_s18 + $0xd8] sm:$0xff] %v3053_v52   ;;  %v3048_v45 = vpack.c.bf16 %v2276_v60, %v2273_v1  ;;  %v2297_v14 = vadd.f32 %v3740_v6, %v5696_v9 }
 0x5e3   : > { %v2288_v11 = vpop.f32.mrf.mxu0 }
 0x5e4   : > { %3100 = vst [vmem:[%s5703_s18 + $0xd0] sm:$0xff] %v3048_v45   ;;  %v2289_v34 = vadd.f32 %v5696_v9, %v2288_v11 }
 0x5e5   : > { %v3741_v13 = vpop.f32.mrf.mxu0 }
 0x5e6   : > { %v2300_v57 = vadd.f32 %v3741_v13, %v5696_v9 }
 0x5e7   : > { %v2291_v32 = vpop.f32.mrf.mxu0 }
 0x5e8   : > { %v3063_v40 = vpack.c.bf16 %v2300_v57, %v2297_v14  ;;  %v2292_v27 = vadd.f32 %v5696_v9, %v2291_v32 }
 0x5e9   : > { %v3744_v29 = vpop.f32.mrf.mxu0 }
 0x5ea   : > { %3103 = vst [vmem:[%s5703_s18 + $0xe8] sm:$0xff] %v3063_v40   ;;  %v3058_v15 = vpack.c.bf16 %v2292_v27, %v2289_v34  ;;  %v2313_v3 = vadd.f32 %v3744_v29, %v5696_v9 }
 0x5eb   : > { %v2304_v58 = vpop.f32.mrf.mxu0 }
 0x5ec   : > { %3102 = vst [vmem:[%s5703_s18 + $0xe0] sm:$0xff] %v3058_v15   ;;  %v2305_v16 = vadd.f32 %v5696_v9, %v2304_v58 }
 0x5ed   : > { %v3745_v4 = vpop.f32.mrf.mxu0 }
 0x5ee   : > { %v2316_v30 = vadd.f32 %v3745_v4, %v5696_v9 }
 0x5ef   : > { %v2307_v38 = vpop.f32.mrf.mxu0 }
 0x5f0   : > { %v3073_v18 = vpack.c.bf16 %v2316_v30, %v2313_v3  ;;  %v2308_v23 = vadd.f32 %v5696_v9, %v2307_v38 }
 0x5f2   : > { %3105 = vst [vmem:[%s5703_s18 + $0xf8] sm:$0xff] %v3073_v18   ;;  %v3068_v37 = vpack.c.bf16 %v2308_v23, %v2305_v16 }
 0x5f4   : > { %3104 = vst [vmem:[%s5703_s18 + $0xf0] sm:$0xff] %v3068_v37  }
 0x5f5   : > { %3895 = shalt.err (!%p3892_p10)
}
 0x5f6   : > { %s3896_s28 = scalar_lea.hbm %s5800_s13, 4096  ;;  %s3900_s16 = scalar_lea.hbm %s5853_s6, 8192 }
 0x5f7   : > { %p3897_p0 = scmp.ne.s32.totalorder %s5800_s13, %s3896_s28  ;;  %p3901_p1 = scmp.lt.s32.totalorder %s5800_s13, %s5853_s6 }
 0x5f8   : > { %p3902_p3 = scmp.lt.s32.totalorder %s3900_s16, %s3896_s28 }
 0x5f9   : > { %p3898_p2 = pnand %p3897_p0, %p6042_p12 }
 0x5fa   : > { %p3903_p6 = por %p3902_p3, %p3901_p1 }
 0x5fb   : > { %p3899_p9 = pneg %p3898_p2 }
 0x5fd   : > { %p3904_p11 = pnand %p3903_p6, %p3899_p9 }
 0x5ff   : > { %3907 = shalt.err (!%p3904_p11)
}
 0x600   : > { %s3954_s11 = smov 64   ;;  %s3955_s8 = smov 4  }
 0x601   : > { %3780 = dma.vmem_to_hbm [thread:$0]  (%p6042_p12), %s5802_s20, 4096, %s5800_s13, %s2640_s25, %s3954_s11, %s3954_s11, %s3955_s8  }
 0x602 PF: > { %s2668_s14 = sand.u32 1, %s3934_s21   ;;  %p6043_p13 = scmp.ne.s32.totalorder %s5919_s10, 0 }
 0x603   : > { %p6044_p4 = scmp.ge.s32.totalorder %s3946_s24, 2  ;;  %s2669_s15 = scalar_lea.sflag [#allocation4], %s2668_s14 }
 0x605   : > { %p3787_p5 = pnand %p6044_p4, %p6043_p13 }
 0x607   : > { %p3788_p7 = pneg %p3787_p5 }
 0x609   : > { %3929 = dma.done.wait (%p3788_p7), %s2669_s15, 4096  }
 0x60a   : > { %3931 = vsyncadd (%p3788_p7), %s2669_s15, 4294963200  ;;  %p19_p8 = scmp.ge.s32.totalorder %s4016_s27, 4   ;;  %s6045_s21 = smov %s3938_s22 }
 0x60b   : > { %s6046_s22 = smov %s3942_s23  ;;  %s6047_s23 = smov %s4028_s30 }
 0x60c   : > { %s6048_s24 = smov %s4016_s27  ;;  %21 = sbr.rel (!%p19_p8) target bundleno = 5 (0x5), region = 89 }
 0x611   :  { %2674 = vsyncpa [#allocation3], 1 }
 0x612   :  { %2676 = vsyncpa [#allocation3 + $0x1], 1 }
 0x613   :  { %2677 = vsyncpa [#allocation4], 1 }
 0x614   :  { %2679 = vsyncpa [#allocation4 + $0x1], 1 }

</bundles_post_ra>
